<compile_context>
chip_gen: v7x
topology: tpu7x:2x2x1
jax: 0.10.0
libtpu: 0.0.40
codegen_flags: <defaults>
</compile_context>

<pallas_src>
import jax
import jax.numpy as jnp
from jax.experimental import pallas as pl
from jax.experimental.pallas import tpu as pltpu

# ----------------------------- model configuration -----------------------------
B = 2          # batch (number of videos)
T = 4          # frames per video
C = 3          # channels
IMG = 16       # frame height/width
P = 8          # spatial patch size
TUBE = 2       # tubelet (temporal patch) size
GH = IMG // P  # spatial grid
GW = IMG // P
S = (T // TUBE) * GH * GW       # sequence length (tubelet tokens) = 8
KIN = C * TUBE * P * P          # flattened tubelet size = 384
H = 32         # hidden size
NH = 4         # attention heads
DH = H // NH   # head dim
FFN = 64       # MLP intermediate size
LAYERS = 2     # transformer layers
LN_EPS = 1e-12


# ------------------------------- in-kernel helpers ------------------------------
def _layer_norm(x, g, b):
    mu = jnp.mean(x, axis=-1, keepdims=True)
    var = jnp.mean((x - mu) * (x - mu), axis=-1, keepdims=True)
    return (x - mu) * jax.lax.rsqrt(var + LN_EPS) * g + b


def _gelu(x):
    # TODO(synk): HF VideoMAE uses exact erf-GELU; tanh approximation is used
    # here (EUP-friendly, negligible numerical difference at this scale).
    return 0.5 * x * (1.0 + jnp.tanh(0.7978845608028654 * (x + 0.044715 * x * x * x)))


# ---------------------------------- the kernel ----------------------------------
def _encoder_kernel(patches_ref, pw_ref, pb_ref, pos_ref,
                    ln1g_ref, ln1b_ref, wqkv_ref, bqkv_ref, wo_ref, bo_ref,
                    ln2g_ref, ln2b_ref, w1_ref, b1_ref, w2_ref, b2_ref,
                    out_ref, x_ref):
    """One grid step == one transformer layer.  x_ref (VMEM scratch) carries the
    residual stream (B*S, H) across grid steps; embeddings are computed at step
    0 and mean pooling at the last step."""
    layer = pl.program_id(0)

    # ---- tubelet-patch embedding + fixed position embeddings (step 0 only) ----
    @pl.when(layer == 0)
    def _():
        emb = jnp.dot(patches_ref[...], pw_ref[...],
                      preferred_element_type=jnp.float32)
        x_ref[...] = emb + pb_ref[...] + pos_ref[...]

    x = x_ref[...]                                    # (B*S, H)

    # ---------------------- self-attention block (pre-LN) ----------------------
    h = _layer_norm(x, ln1g_ref[...], ln1b_ref[...])
    qkv = jnp.dot(h, wqkv_ref[...], preferred_element_type=jnp.float32)
    qkv = qkv + bqkv_ref[...]                         # (B*S, 3H) fused QKV

    scale = 1.0 / (DH ** 0.5)
    ctx_rows = []
    for bi in range(B):                               # statically unrolled
        r0 = bi * S
        heads = []
        for hi in range(NH):
            q_bh = qkv[r0:r0 + S, hi * DH:(hi + 1) * DH]                  # (S, DH)
            k_bh = qkv[r0:r0 + S, H + hi * DH:H + (hi + 1) * DH]          # (S, DH)
            v_bh = qkv[r0:r0 + S, 2 * H + hi * DH:2 * H + (hi + 1) * DH]  # (S, DH)
            s = jax.lax.dot_general(q_bh, k_bh, (((1,), (1,)), ((), ())),
                                    preferred_element_type=jnp.float32) * scale
            s = s - jnp.max(s, axis=-1, keepdims=True)
            p = jnp.exp(s)
            p = p / jnp.sum(p, axis=-1, keepdims=True)
            heads.append(jnp.dot(p, v_bh, preferred_element_type=jnp.float32))
        ctx_rows.append(jnp.concatenate(heads, axis=1))                   # (S, H)
    ctx = jnp.concatenate(ctx_rows, axis=0)                               # (B*S, H)

    attn_out = jnp.dot(ctx, wo_ref[...], preferred_element_type=jnp.float32)
    attn_out = attn_out + bo_ref[...]
    x = x + attn_out

    # ----------------------------- MLP block (pre-LN) --------------------------
    h = _layer_norm(x, ln2g_ref[...], ln2b_ref[...])
    h = jnp.dot(h, w1_ref[...], preferred_element_type=jnp.float32) + b1_ref[...]
    h = _gelu(h)
    h = jnp.dot(h, w2_ref[...], preferred_element_type=jnp.float32) + b2_ref[...]
    x = x + h

    x_ref[...] = x                                    # keep residual stream in VMEM

    # ---------------- mean pooling over sequence (last layer only) -------------
    @pl.when(layer == LAYERS - 1)
    def _():
        rows = []
        for bi in range(B):
            rows.append(jnp.mean(x[bi * S:(bi + 1) * S, :], axis=0, keepdims=True))
        out_ref[...] = jnp.concatenate(rows, axis=0)  # (B, H)


# --------------------------------- host wrapper ---------------------------------
def video_encoder_forward(params, pixel_values):
    """pixel_values: (B, T, C, IMG, IMG) float32 in [0, 1].  Returns (B, H)."""
    # Processor semantics (rescale + normalize). The PIL resize has no Pallas
    # equivalent (TODO(synk)); frames are assumed to already be IMG x IMG.
    mean = jnp.array([0.485, 0.456, 0.406], jnp.float32).reshape(1, 1, C, 1, 1)
    std = jnp.array([0.229, 0.224, 0.225], jnp.float32).reshape(1, 1, C, 1, 1)
    pv = (pixel_values - mean) / std

    # Tubelet / patch extraction: pure layout glue (equivalent to the stride-P
    # Conv3d patchification); the projection matmul itself runs in the kernel.
    x = pv.reshape(B, T // TUBE, TUBE, C, GH, P, GW, P)
    x = x.transpose(0, 1, 4, 6, 3, 2, 5, 7)           # (b, t', gh, gw, c, dt, ph, pw)
    patches = x.reshape(B * S, KIN)

    pos = jnp.tile(params["pos"], (B, 1))             # (B*S, H)

    lw = lambda l: (l, 0, 0)                          # per-layer weight index map
    full2 = lambda l: (0, 0)

    out = pl.pallas_call(
        _encoder_kernel,
        out_shape=jax.ShapeDtypeStruct((B, H), jnp.float32),
        grid=(LAYERS,),
        in_specs=[
            pl.BlockSpec((B * S, KIN), full2),            # patches
            pl.BlockSpec((KIN, H), full2),                # patch_w
            pl.BlockSpec((1, H), full2),                  # patch_b
            pl.BlockSpec((B * S, H), full2),              # pos embeddings
            pl.BlockSpec((None, 1, H), lw),               # ln1_g
            pl.BlockSpec((None, 1, H), lw),               # ln1_b
            pl.BlockSpec((None, H, 3 * H), lw),           # wqkv (fused)
            pl.BlockSpec((None, 1, 3 * H), lw),           # bqkv
            pl.BlockSpec((None, H, H), lw),               # wo
            pl.BlockSpec((None, 1, H), lw),               # bo
            pl.BlockSpec((None, 1, H), lw),               # ln2_g
            pl.BlockSpec((None, 1, H), lw),               # ln2_b
            pl.BlockSpec((None, H, FFN), lw),             # w1
            pl.BlockSpec((None, 1, FFN), lw),             # b1
            pl.BlockSpec((None, FFN, H), lw),             # w2
            pl.BlockSpec((None, 1, H), lw),               # b2
        ],
        out_specs=pl.BlockSpec((B, H), full2),
        scratch_shapes=[pltpu.VMEM((B * S, H), jnp.float32)],
        compiler_params=pltpu.CompilerParams(
            dimension_semantics=("arbitrary",)),          # layers are sequential
    )(patches, params["patch_w"], params["patch_b"], pos,
      params["ln1_g"], params["ln1_b"], params["wqkv"], params["bqkv"],
      params["wo"], params["bo"], params["ln2_g"], params["ln2_b"],
      params["w1"], params["b1"], params["w2"], params["b2"])
    return out


# -------------------------------- parameter setup -------------------------------
def _sinusoid_table(n_pos, d):
    pos = jnp.arange(n_pos, dtype=jnp.float32)[:, None]
    i = jnp.arange(d, dtype=jnp.float32)[None, :]
    angle = pos / jnp.power(10000.0, 2.0 * jnp.floor(i / 2.0) / d)
    return jnp.where((jnp.arange(d) % 2) == 0, jnp.sin(angle), jnp.cos(angle)
                     ).astype(jnp.float32)


def init_params(key):
    # TODO(synk): pretrained 'MCG-NJU/videomae-base-finetuned-kinetics400'
    # weights cannot be downloaded here; deterministic random init at toy size.
    ks = jax.random.split(key, 6)
    nrm = lambda k, shape: 0.02 * jax.random.normal(k, shape, jnp.float32)
    return {
        "patch_w": nrm(ks[0], (KIN, H)),
        "patch_b": jnp.zeros((1, H), jnp.float32),
        "pos": _sinusoid_table(S, H),                       # fixed sinusoidal (S, H)
        "ln1_g": jnp.ones((LAYERS, 1, H), jnp.float32),
        "ln1_b": jnp.zeros((LAYERS, 1, H), jnp.float32),
        "wqkv": nrm(ks[1], (LAYERS, H, 3 * H)),             # fused Q|K|V
        "bqkv": jnp.zeros((LAYERS, 1, 3 * H), jnp.float32),
        "wo": nrm(ks[2], (LAYERS, H, H)),
        "bo": jnp.zeros((LAYERS, 1, H), jnp.float32),
        "ln2_g": jnp.ones((LAYERS, 1, H), jnp.float32),
        "ln2_b": jnp.zeros((LAYERS, 1, H), jnp.float32),
        "w1": nrm(ks[3], (LAYERS, H, FFN)),
        "b1": jnp.zeros((LAYERS, 1, FFN), jnp.float32),
        "w2": nrm(ks[4], (LAYERS, FFN, H)),
        "b2": jnp.zeros((LAYERS, 1, H), jnp.float32),
    }


# --------------------------------------- main -----------------------------------
if __name__ == "__main__":
    key = jax.random.PRNGKey(0)
    k_params, k_video = jax.random.split(key)

    params = init_params(k_params)

    # deterministic synthetic "video_frames_list": (B, T, C, IMG, IMG) in [0, 1]
    video = jax.random.uniform(k_video, (B, T, C, IMG, IMG), dtype=jnp.float32)

    pooled = jax.jit(video_encoder_forward)(params, video)
    jax.block_until_ready(pooled)

    assert pooled.shape == (B, H)
    assert pooled.dtype == jnp.float32
    print("KERNEL_OK")
</pallas_src>

<mosaic_0001>
module attributes {stable_mosaic.version = 11 : i64} {
  func.func @_encoder_kernel(%arg0: i32, %arg1: memref<16x384xf32, #tpu.memory_space<vmem>>, %arg2: memref<384x32xf32, #tpu.memory_space<vmem>>, %arg3: memref<1x32xf32, #tpu.memory_space<vmem>>, %arg4: memref<16x32xf32, #tpu.memory_space<vmem>>, %arg5: memref<1x1x32xf32, #tpu.memory_space<vmem>>, %arg6: memref<1x1x32xf32, #tpu.memory_space<vmem>>, %arg7: memref<1x32x96xf32, #tpu.memory_space<vmem>>, %arg8: memref<1x1x96xf32, #tpu.memory_space<vmem>>, %arg9: memref<1x32x32xf32, #tpu.memory_space<vmem>>, %arg10: memref<1x1x32xf32, #tpu.memory_space<vmem>>, %arg11: memref<1x1x32xf32, #tpu.memory_space<vmem>>, %arg12: memref<1x1x32xf32, #tpu.memory_space<vmem>>, %arg13: memref<1x32x64xf32, #tpu.memory_space<vmem>>, %arg14: memref<1x1x64xf32, #tpu.memory_space<vmem>>, %arg15: memref<1x64x32xf32, #tpu.memory_space<vmem>>, %arg16: memref<1x1x32xf32, #tpu.memory_space<vmem>>, %arg17: memref<2x32xf32, #tpu.memory_space<vmem>>, %arg18: memref<16x32xf32, #tpu.memory_space<vmem>>) attributes {dimension_semantics = [#tpu.dimension_semantics<arbitrary>], iteration_bounds = array<i64: 2>, scalar_prefetch = 0 : i64, scratch_operands = 1 : i64, tpu.core_type = #tpu.core_type<tc>, window_params = [{pipeline_mode = #tpu.pipeline_mode<synchronous>, transform_indices = @transform_0, window_bounds = array<i64: 16, 384>}, {pipeline_mode = #tpu.pipeline_mode<synchronous>, transform_indices = @transform_1, window_bounds = array<i64: 384, 32>}, {pipeline_mode = #tpu.pipeline_mode<synchronous>, transform_indices = @transform_2, window_bounds = array<i64: 1, 32>}, {pipeline_mode = #tpu.pipeline_mode<synchronous>, transform_indices = @transform_3, window_bounds = array<i64: 16, 32>}, {transform_indices = @transform_4, window_bounds = array<i64: 1, 1, 32>}, {transform_indices = @transform_5, window_bounds = array<i64: 1, 1, 32>}, {transform_indices = @transform_6, window_bounds = array<i64: 1, 32, 96>}, {transform_indices = @transform_7, window_bounds = array<i64: 1, 1, 96>}, {transform_indices = @transform_8, window_bounds = array<i64: 1, 32, 32>}, {transform_indices = @transform_9, window_bounds = array<i64: 1, 1, 32>}, {transform_indices = @transform_10, window_bounds = array<i64: 1, 1, 32>}, {transform_indices = @transform_11, window_bounds = array<i64: 1, 1, 32>}, {transform_indices = @transform_12, window_bounds = array<i64: 1, 32, 64>}, {transform_indices = @transform_13, window_bounds = array<i64: 1, 1, 64>}, {transform_indices = @transform_14, window_bounds = array<i64: 1, 64, 32>}, {transform_indices = @transform_15, window_bounds = array<i64: 1, 1, 32>}, {pipeline_mode = #tpu.pipeline_mode<synchronous>, transform_indices = @transform_16, window_bounds = array<i64: 2, 32>}]} {
    %c0_i32 = arith.constant 0 : i32
    %0 = arith.cmpi eq, %arg0, %c0_i32 : i32
    %1 = arith.extui %0 : i1 to i32
    %c0_i32_0 = arith.constant 0 : i32
    %2 = arith.cmpi ne, %1, %c0_i32_0 : i32
    scf.if %2 {
      %c0_98 = arith.constant 0 : index
      %c0_99 = arith.constant 0 : index
      %238 = vector.load %arg1[%c0_98, %c0_99] : memref<16x384xf32, #tpu.memory_space<vmem>>, vector<16x384xf32>
      %c0_100 = arith.constant 0 : index
      %c0_101 = arith.constant 0 : index
      %239 = vector.load %arg2[%c0_100, %c0_101] : memref<384x32xf32, #tpu.memory_space<vmem>>, vector<384x32xf32>
      %cst_102 = arith.constant dense<0.000000e+00> : vector<16x32xf32>
      %240 = tpu.matmul %238, %239, %cst_102 {dimension_numbers = #tpu.dot_dimension_numbers<[1], [0], [0], [1], [0, 0, 1, 1], [], []>} : vector<16x384xf32>, vector<384x32xf32>, vector<16x32xf32> -> vector<16x32xf32>
      %c0_103 = arith.constant 0 : index
      %c0_104 = arith.constant 0 : index
      %241 = vector.load %arg3[%c0_103, %c0_104] : memref<1x32xf32, #tpu.memory_space<vmem>>, vector<1x32xf32>
      %242 = vector.broadcast %241 : vector<1x32xf32> to vector<16x32xf32>
      %243 = arith.addf %240, %242 : vector<16x32xf32>
      %c0_105 = arith.constant 0 : index
      %c0_106 = arith.constant 0 : index
      %244 = vector.load %arg4[%c0_105, %c0_106] : memref<16x32xf32, #tpu.memory_space<vmem>>, vector<16x32xf32>
      %245 = arith.addf %243, %244 : vector<16x32xf32>
      %c0_107 = arith.constant 0 : index
      %c0_108 = arith.constant 0 : index
      %246 = vector.load %arg18[%c0_107, %c0_108] : memref<16x32xf32, #tpu.memory_space<vmem>>, vector<16x32xf32>
      tpu.vector_store %arg18[%c0_107, %c0_108], %245 {strides = array<i32>} : memref<16x32xf32, #tpu.memory_space<vmem>>, vector<16x32xf32>,
    } else {
    }
    %c0 = arith.constant 0 : index
    %c0_1 = arith.constant 0 : index
    %3 = vector.load %arg18[%c0, %c0_1] : memref<16x32xf32, #tpu.memory_space<vmem>>, vector<16x32xf32>
    %c0_2 = arith.constant 0 : index
    %c0_3 = arith.constant 0 : index
    %c0_4 = arith.constant 0 : index
    %4 = vector.load %arg5[%c0_2, %c0_3, %c0_4] : memref<1x1x32xf32, #tpu.memory_space<vmem>>, vector<1x1x32xf32>
    %5 = vector.shape_cast %4 : vector<1x1x32xf32> to vector<1x32xf32>
    %c0_5 = arith.constant 0 : index
    %c0_6 = arith.constant 0 : index
    %c0_7 = arith.constant 0 : index
    %6 = vector.load %arg6[%c0_5, %c0_6, %c0_7] : memref<1x1x32xf32, #tpu.memory_space<vmem>>, vector<1x1x32xf32>
    %7 = vector.shape_cast %6 : vector<1x1x32xf32> to vector<1x32xf32>
    %cst = arith.constant dense<0.000000e+00> : vector<16xf32>
    %8 = vector.multi_reduction <add>, %3, %cst [1] : vector<16x32xf32> to vector<16xf32>
    %9 = vector.shape_cast %8 : vector<16xf32> to vector<16x1xf32>
    %cst_8 = arith.constant 3.200000e+01 : f32
    %10 = vector.broadcast %cst_8 : f32 to vector<16x1xf32>
    %11 = arith.divf %9, %10 : vector<16x1xf32>
    %12 = vector.broadcast %11 : vector<16x1xf32> to vector<16x32xf32>
    %13 = arith.subf %3, %12 : vector<16x32xf32>
    %14 = vector.broadcast %11 : vector<16x1xf32> to vector<16x32xf32>
    %15 = arith.subf %3, %14 : vector<16x32xf32>
    %16 = arith.mulf %13, %15 : vector<16x32xf32>
    %cst_9 = arith.constant dense<0.000000e+00> : vector<16xf32>
    %17 = vector.multi_reduction <add>, %16, %cst_9 [1] : vector<16x32xf32> to vector<16xf32>
    %18 = vector.shape_cast %17 : vector<16xf32> to vector<16x1xf32>
    %cst_10 = arith.constant 3.200000e+01 : f32
    %19 = vector.broadcast %cst_10 : f32 to vector<16x1xf32>
    %20 = arith.divf %18, %19 : vector<16x1xf32>
    %21 = vector.broadcast %11 : vector<16x1xf32> to vector<16x32xf32>
    %22 = arith.subf %3, %21 : vector<16x32xf32>
    %cst_11 = arith.constant 9.99999996E-13 : f32
    %23 = vector.broadcast %cst_11 : f32 to vector<16x1xf32>
    %24 = arith.addf %20, %23 : vector<16x1xf32>
    %25 = math.rsqrt %24 : vector<16x1xf32>
    %26 = vector.broadcast %25 : vector<16x1xf32> to vector<16x32xf32>
    %27 = arith.mulf %22, %26 : vector<16x32xf32>
    %28 = vector.broadcast %5 : vector<1x32xf32> to vector<16x32xf32>
    %29 = arith.mulf %27, %28 : vector<16x32xf32>
    %30 = vector.broadcast %7 : vector<1x32xf32> to vector<16x32xf32>
    %31 = arith.addf %29, %30 : vector<16x32xf32>
    %c0_12 = arith.constant 0 : index
    %c0_13 = arith.constant 0 : index
    %c0_14 = arith.constant 0 : index
    %32 = vector.load %arg7[%c0_12, %c0_13, %c0_14] : memref<1x32x96xf32, #tpu.memory_space<vmem>>, vector<1x32x96xf32>
    %33 = vector.shape_cast %32 : vector<1x32x96xf32> to vector<32x96xf32>
    %cst_15 = arith.constant dense<0.000000e+00> : vector<16x96xf32>
    %34 = tpu.matmul %31, %33, %cst_15 {dimension_numbers = #tpu.dot_dimension_numbers<[1], [0], [0], [1], [0, 0, 1, 1], [], []>} : vector<16x32xf32>, vector<32x96xf32>, vector<16x96xf32> -> vector<16x96xf32>
    %c0_16 = arith.constant 0 : index
    %c0_17 = arith.constant 0 : index
    %c0_18 = arith.constant 0 : index
    %35 = vector.load %arg8[%c0_16, %c0_17, %c0_18] : memref<1x1x96xf32, #tpu.memory_space<vmem>>, vector<1x1x96xf32>
    %36 = vector.shape_cast %35 : vector<1x1x96xf32> to vector<1x96xf32>
    %37 = vector.broadcast %36 : vector<1x96xf32> to vector<16x96xf32>
    %38 = arith.addf %34, %37 : vector<16x96xf32>
    %39 = vector.extract_strided_slice %38 {offsets = [0, 0], sizes = [8, 8], strides = [1, 1]} : vector<16x96xf32> to vector<8x8xf32>
    %40 = vector.extract_strided_slice %38 {offsets = [0, 32], sizes = [8, 8], strides = [1, 1]} : vector<16x96xf32> to vector<8x8xf32>
    %41 = vector.extract_strided_slice %38 {offsets = [0, 64], sizes = [8, 8], strides = [1, 1]} : vector<16x96xf32> to vector<8x8xf32>
    %cst_19 = arith.constant dense<0.000000e+00> : vector<8x8xf32>
    %42 = tpu.matmul %39, %40, %cst_19 {dimension_numbers = #tpu.dot_dimension_numbers<[1], [1], [0], [0], [0, 0, 1, 0], [], []>} : vector<8x8xf32>, vector<8x8xf32>, vector<8x8xf32> -> vector<8x8xf32>
    %cst_20 = arith.constant 0.353553385 : f32
    %43 = vector.broadcast %cst_20 : f32 to vector<8x8xf32>
    %44 = arith.mulf %42, %43 : vector<8x8xf32>
    %cst_21 = arith.constant dense<0xFF800000> : vector<8xf32>
    %45 = vector.multi_reduction <maximumf>, %44, %cst_21 [1] : vector<8x8xf32> to vector<8xf32>
    %46 = vector.shape_cast %45 : vector<8xf32> to vector<8x1xf32>
    %47 = vector.broadcast %46 : vector<8x1xf32> to vector<8x8xf32>
    %48 = arith.subf %44, %47 : vector<8x8xf32>
    %49 = math.exp %48 : vector<8x8xf32>
    %cst_22 = arith.constant dense<0.000000e+00> : vector<8xf32>
    %50 = vector.multi_reduction <add>, %49, %cst_22 [1] : vector<8x8xf32> to vector<8xf32>
    %51 = vector.shape_cast %50 : vector<8xf32> to vector<8x1xf32>
    %52 = vector.broadcast %51 : vector<8x1xf32> to vector<8x8xf32>
    %53 = arith.divf %49, %52 : vector<8x8xf32>
    %cst_23 = arith.constant dense<0.000000e+00> : vector<8x8xf32>
    %54 = tpu.matmul %53, %41, %cst_23 {dimension_numbers = #tpu.dot_dimension_numbers<[1], [0], [0], [1], [0, 0, 1, 1], [], []>} : vector<8x8xf32>, vector<8x8xf32>, vector<8x8xf32> -> vector<8x8xf32>
    %55 = vector.extract_strided_slice %38 {offsets = [0, 8], sizes = [8, 8], strides = [1, 1]} : vector<16x96xf32> to vector<8x8xf32>
    %56 = vector.extract_strided_slice %38 {offsets = [0, 40], sizes = [8, 8], strides = [1, 1]} : vector<16x96xf32> to vector<8x8xf32>
    %57 = vector.extract_strided_slice %38 {offsets = [0, 72], sizes = [8, 8], strides = [1, 1]} : vector<16x96xf32> to vector<8x8xf32>
    %cst_24 = arith.constant dense<0.000000e+00> : vector<8x8xf32>
    %58 = tpu.matmul %55, %56, %cst_24 {dimension_numbers = #tpu.dot_dimension_numbers<[1], [1], [0], [0], [0, 0, 1, 0], [], []>} : vector<8x8xf32>, vector<8x8xf32>, vector<8x8xf32> -> vector<8x8xf32>
    %cst_25 = arith.constant 0.353553385 : f32
    %59 = vector.broadcast %cst_25 : f32 to vector<8x8xf32>
    %60 = arith.mulf %58, %59 : vector<8x8xf32>
    %cst_26 = arith.constant dense<0xFF800000> : vector<8xf32>
    %61 = vector.multi_reduction <maximumf>, %60, %cst_26 [1] : vector<8x8xf32> to vector<8xf32>
    %62 = vector.shape_cast %61 : vector<8xf32> to vector<8x1xf32>
    %63 = vector.broadcast %62 : vector<8x1xf32> to vector<8x8xf32>
    %64 = arith.subf %60, %63 : vector<8x8xf32>
    %65 = math.exp %64 : vector<8x8xf32>
    %cst_27 = arith.constant dense<0.000000e+00> : vector<8xf32>
    %66 = vector.multi_reduction <add>, %65, %cst_27 [1] : vector<8x8xf32> to vector<8xf32>
    %67 = vector.shape_cast %66 : vector<8xf32> to vector<8x1xf32>
    %68 = vector.broadcast %67 : vector<8x1xf32> to vector<8x8xf32>
    %69 = arith.divf %65, %68 : vector<8x8xf32>
    %cst_28 = arith.constant dense<0.000000e+00> : vector<8x8xf32>
    %70 = tpu.matmul %69, %57, %cst_28 {dimension_numbers = #tpu.dot_dimension_numbers<[1], [0], [0], [1], [0, 0, 1, 1], [], []>} : vector<8x8xf32>, vector<8x8xf32>, vector<8x8xf32> -> vector<8x8xf32>
    %71 = vector.extract_strided_slice %38 {offsets = [0, 16], sizes = [8, 8], strides = [1, 1]} : vector<16x96xf32> to vector<8x8xf32>
    %72 = vector.extract_strided_slice %38 {offsets = [0, 48], sizes = [8, 8], strides = [1, 1]} : vector<16x96xf32> to vector<8x8xf32>
    %73 = vector.extract_strided_slice %38 {offsets = [0, 80], sizes = [8, 8], strides = [1, 1]} : vector<16x96xf32> to vector<8x8xf32>
    %cst_29 = arith.constant dense<0.000000e+00> : vector<8x8xf32>
    %74 = tpu.matmul %71, %72, %cst_29 {dimension_numbers = #tpu.dot_dimension_numbers<[1], [1], [0], [0], [0, 0, 1, 0], [], []>} : vector<8x8xf32>, vector<8x8xf32>, vector<8x8xf32> -> vector<8x8xf32>
    %cst_30 = arith.constant 0.353553385 : f32
    %75 = vector.broadcast %cst_30 : f32 to vector<8x8xf32>
    %76 = arith.mulf %74, %75 : vector<8x8xf32>
    %cst_31 = arith.constant dense<0xFF800000> : vector<8xf32>
    %77 = vector.multi_reduction <maximumf>, %76, %cst_31 [1] : vector<8x8xf32> to vector<8xf32>
    %78 = vector.shape_cast %77 : vector<8xf32> to vector<8x1xf32>
    %79 = vector.broadcast %78 : vector<8x1xf32> to vector<8x8xf32>
    %80 = arith.subf %76, %79 : vector<8x8xf32>
    %81 = math.exp %80 : vector<8x8xf32>
    %cst_32 = arith.constant dense<0.000000e+00> : vector<8xf32>
    %82 = vector.multi_reduction <add>, %81, %cst_32 [1] : vector<8x8xf32> to vector<8xf32>
    %83 = vector.shape_cast %82 : vector<8xf32> to vector<8x1xf32>
    %84 = vector.broadcast %83 : vector<8x1xf32> to vector<8x8xf32>
    %85 = arith.divf %81, %84 : vector<8x8xf32>
    %cst_33 = arith.constant dense<0.000000e+00> : vector<8x8xf32>
    %86 = tpu.matmul %85, %73, %cst_33 {dimension_numbers = #tpu.dot_dimension_numbers<[1], [0], [0], [1], [0, 0, 1, 1], [], []>} : vector<8x8xf32>, vector<8x8xf32>, vector<8x8xf32> -> vector<8x8xf32>
    %87 = vector.extract_strided_slice %38 {offsets = [0, 24], sizes = [8, 8], strides = [1, 1]} : vector<16x96xf32> to vector<8x8xf32>
    %88 = vector.extract_strided_slice %38 {offsets = [0, 56], sizes = [8, 8], strides = [1, 1]} : vector<16x96xf32> to vector<8x8xf32>
    %89 = vector.extract_strided_slice %38 {offsets = [0, 88], sizes = [8, 8], strides = [1, 1]} : vector<16x96xf32> to vector<8x8xf32>
    %cst_34 = arith.constant dense<0.000000e+00> : vector<8x8xf32>
    %90 = tpu.matmul %87, %88, %cst_34 {dimension_numbers = #tpu.dot_dimension_numbers<[1], [1], [0], [0], [0, 0, 1, 0], [], []>} : vector<8x8xf32>, vector<8x8xf32>, vector<8x8xf32> -> vector<8x8xf32>
    %cst_35 = arith.constant 0.353553385 : f32
    %91 = vector.broadcast %cst_35 : f32 to vector<8x8xf32>
    %92 = arith.mulf %90, %91 : vector<8x8xf32>
    %cst_36 = arith.constant dense<0xFF800000> : vector<8xf32>
    %93 = vector.multi_reduction <maximumf>, %92, %cst_36 [1] : vector<8x8xf32> to vector<8xf32>
    %94 = vector.shape_cast %93 : vector<8xf32> to vector<8x1xf32>
    %95 = vector.broadcast %94 : vector<8x1xf32> to vector<8x8xf32>
    %96 = arith.subf %92, %95 : vector<8x8xf32>
    %97 = math.exp %96 : vector<8x8xf32>
    %cst_37 = arith.constant dense<0.000000e+00> : vector<8xf32>
    %98 = vector.multi_reduction <add>, %97, %cst_37 [1] : vector<8x8xf32> to vector<8xf32>
    %99 = vector.shape_cast %98 : vector<8xf32> to vector<8x1xf32>
    %100 = vector.broadcast %99 : vector<8x1xf32> to vector<8x8xf32>
    %101 = arith.divf %97, %100 : vector<8x8xf32>
    %cst_38 = arith.constant dense<0.000000e+00> : vector<8x8xf32>
    %102 = tpu.matmul %101, %89, %cst_38 {dimension_numbers = #tpu.dot_dimension_numbers<[1], [0], [0], [1], [0, 0, 1, 1], [], []>} : vector<8x8xf32>, vector<8x8xf32>, vector<8x8xf32> -> vector<8x8xf32>
    %103 = tpu.concatenate %54, %70, %86, %102 in 1 : vector<8x8xf32>, vector<8x8xf32>, vector<8x8xf32>, vector<8x8xf32> -> vector<8x32xf32>
    %104 = vector.extract_strided_slice %38 {offsets = [8, 0], sizes = [8, 8], strides = [1, 1]} : vector<16x96xf32> to vector<8x8xf32>
    %105 = vector.extract_strided_slice %38 {offsets = [8, 32], sizes = [8, 8], strides = [1, 1]} : vector<16x96xf32> to vector<8x8xf32>
    %106 = vector.extract_strided_slice %38 {offsets = [8, 64], sizes = [8, 8], strides = [1, 1]} : vector<16x96xf32> to vector<8x8xf32>
    %cst_39 = arith.constant dense<0.000000e+00> : vector<8x8xf32>
    %107 = tpu.matmul %104, %105, %cst_39 {dimension_numbers = #tpu.dot_dimension_numbers<[1], [1], [0], [0], [0, 0, 1, 0], [], []>} : vector<8x8xf32>, vector<8x8xf32>, vector<8x8xf32> -> vector<8x8xf32>
    %cst_40 = arith.constant 0.353553385 : f32
    %108 = vector.broadcast %cst_40 : f32 to vector<8x8xf32>
    %109 = arith.mulf %107, %108 : vector<8x8xf32>
    %cst_41 = arith.constant dense<0xFF800000> : vector<8xf32>
    %110 = vector.multi_reduction <maximumf>, %109, %cst_41 [1] : vector<8x8xf32> to vector<8xf32>
    %111 = vector.shape_cast %110 : vector<8xf32> to vector<8x1xf32>
    %112 = vector.broadcast %111 : vector<8x1xf32> to vector<8x8xf32>
    %113 = arith.subf %109, %112 : vector<8x8xf32>
    %114 = math.exp %113 : vector<8x8xf32>
    %cst_42 = arith.constant dense<0.000000e+00> : vector<8xf32>
    %115 = vector.multi_reduction <add>, %114, %cst_42 [1] : vector<8x8xf32> to vector<8xf32>
    %116 = vector.shape_cast %115 : vector<8xf32> to vector<8x1xf32>
    %117 = vector.broadcast %116 : vector<8x1xf32> to vector<8x8xf32>
    %118 = arith.divf %114, %117 : vector<8x8xf32>
    %cst_43 = arith.constant dense<0.000000e+00> : vector<8x8xf32>
    %119 = tpu.matmul %118, %106, %cst_43 {dimension_numbers = #tpu.dot_dimension_numbers<[1], [0], [0], [1], [0, 0, 1, 1], [], []>} : vector<8x8xf32>, vector<8x8xf32>, vector<8x8xf32> -> vector<8x8xf32>
    %120 = vector.extract_strided_slice %38 {offsets = [8, 8], sizes = [8, 8], strides = [1, 1]} : vector<16x96xf32> to vector<8x8xf32>
    %121 = vector.extract_strided_slice %38 {offsets = [8, 40], sizes = [8, 8], strides = [1, 1]} : vector<16x96xf32> to vector<8x8xf32>
    %122 = vector.extract_strided_slice %38 {offsets = [8, 72], sizes = [8, 8], strides = [1, 1]} : vector<16x96xf32> to vector<8x8xf32>
    %cst_44 = arith.constant dense<0.000000e+00> : vector<8x8xf32>
    %123 = tpu.matmul %120, %121, %cst_44 {dimension_numbers = #tpu.dot_dimension_numbers<[1], [1], [0], [0], [0, 0, 1, 0], [], []>} : vector<8x8xf32>, vector<8x8xf32>, vector<8x8xf32> -> vector<8x8xf32>
    %cst_45 = arith.constant 0.353553385 : f32
    %124 = vector.broadcast %cst_45 : f32 to vector<8x8xf32>
    %125 = arith.mulf %123, %124 : vector<8x8xf32>
    %cst_46 = arith.constant dense<0xFF800000> : vector<8xf32>
    %126 = vector.multi_reduction <maximumf>, %125, %cst_46 [1] : vector<8x8xf32> to vector<8xf32>
    %127 = vector.shape_cast %126 : vector<8xf32> to vector<8x1xf32>
    %128 = vector.broadcast %127 : vector<8x1xf32> to vector<8x8xf32>
    %129 = arith.subf %125, %128 : vector<8x8xf32>
    %130 = math.exp %129 : vector<8x8xf32>
    %cst_47 = arith.constant dense<0.000000e+00> : vector<8xf32>
    %131 = vector.multi_reduction <add>, %130, %cst_47 [1] : vector<8x8xf32> to vector<8xf32>
    %132 = vector.shape_cast %131 : vector<8xf32> to vector<8x1xf32>
    %133 = vector.broadcast %132 : vector<8x1xf32> to vector<8x8xf32>
    %134 = arith.divf %130, %133 : vector<8x8xf32>
    %cst_48 = arith.constant dense<0.000000e+00> : vector<8x8xf32>
    %135 = tpu.matmul %134, %122, %cst_48 {dimension_numbers = #tpu.dot_dimension_numbers<[1], [0], [0], [1], [0, 0, 1, 1], [], []>} : vector<8x8xf32>, vector<8x8xf32>, vector<8x8xf32> -> vector<8x8xf32>
    %136 = vector.extract_strided_slice %38 {offsets = [8, 16], sizes = [8, 8], strides = [1, 1]} : vector<16x96xf32> to vector<8x8xf32>
    %137 = vector.extract_strided_slice %38 {offsets = [8, 48], sizes = [8, 8], strides = [1, 1]} : vector<16x96xf32> to vector<8x8xf32>
    %138 = vector.extract_strided_slice %38 {offsets = [8, 80], sizes = [8, 8], strides = [1, 1]} : vector<16x96xf32> to vector<8x8xf32>
    %cst_49 = arith.constant dense<0.000000e+00> : vector<8x8xf32>
    %139 = tpu.matmul %136, %137, %cst_49 {dimension_numbers = #tpu.dot_dimension_numbers<[1], [1], [0], [0], [0, 0, 1, 0], [], []>} : vector<8x8xf32>, vector<8x8xf32>, vector<8x8xf32> -> vector<8x8xf32>
    %cst_50 = arith.constant 0.353553385 : f32
    %140 = vector.broadcast %cst_50 : f32 to vector<8x8xf32>
    %141 = arith.mulf %139, %140 : vector<8x8xf32>
    %cst_51 = arith.constant dense<0xFF800000> : vector<8xf32>
    %142 = vector.multi_reduction <maximumf>, %141, %cst_51 [1] : vector<8x8xf32> to vector<8xf32>
    %143 = vector.shape_cast %142 : vector<8xf32> to vector<8x1xf32>
    %144 = vector.broadcast %143 : vector<8x1xf32> to vector<8x8xf32>
    %145 = arith.subf %141, %144 : vector<8x8xf32>
    %146 = math.exp %145 : vector<8x8xf32>
    %cst_52 = arith.constant dense<0.000000e+00> : vector<8xf32>
    %147 = vector.multi_reduction <add>, %146, %cst_52 [1] : vector<8x8xf32> to vector<8xf32>
    %148 = vector.shape_cast %147 : vector<8xf32> to vector<8x1xf32>
    %149 = vector.broadcast %148 : vector<8x1xf32> to vector<8x8xf32>
    %150 = arith.divf %146, %149 : vector<8x8xf32>
    %cst_53 = arith.constant dense<0.000000e+00> : vector<8x8xf32>
    %151 = tpu.matmul %150, %138, %cst_53 {dimension_numbers = #tpu.dot_dimension_numbers<[1], [0], [0], [1], [0, 0, 1, 1], [], []>} : vector<8x8xf32>, vector<8x8xf32>, vector<8x8xf32> -> vector<8x8xf32>
    %152 = vector.extract_strided_slice %38 {offsets = [8, 24], sizes = [8, 8], strides = [1, 1]} : vector<16x96xf32> to vector<8x8xf32>
    %153 = vector.extract_strided_slice %38 {offsets = [8, 56], sizes = [8, 8], strides = [1, 1]} : vector<16x96xf32> to vector<8x8xf32>
    %154 = vector.extract_strided_slice %38 {offsets = [8, 88], sizes = [8, 8], strides = [1, 1]} : vector<16x96xf32> to vector<8x8xf32>
    %cst_54 = arith.constant dense<0.000000e+00> : vector<8x8xf32>
    %155 = tpu.matmul %152, %153, %cst_54 {dimension_numbers = #tpu.dot_dimension_numbers<[1], [1], [0], [0], [0, 0, 1, 0], [], []>} : vector<8x8xf32>, vector<8x8xf32>, vector<8x8xf32> -> vector<8x8xf32>
    %cst_55 = arith.constant 0.353553385 : f32
    %156 = vector.broadcast %cst_55 : f32 to vector<8x8xf32>
    %157 = arith.mulf %155, %156 : vector<8x8xf32>
    %cst_56 = arith.constant dense<0xFF800000> : vector<8xf32>
    %158 = vector.multi_reduction <maximumf>, %157, %cst_56 [1] : vector<8x8xf32> to vector<8xf32>
    %159 = vector.shape_cast %158 : vector<8xf32> to vector<8x1xf32>
    %160 = vector.broadcast %159 : vector<8x1xf32> to vector<8x8xf32>
    %161 = arith.subf %157, %160 : vector<8x8xf32>
    %162 = math.exp %161 : vector<8x8xf32>
    %cst_57 = arith.constant dense<0.000000e+00> : vector<8xf32>
    %163 = vector.multi_reduction <add>, %162, %cst_57 [1] : vector<8x8xf32> to vector<8xf32>
    %164 = vector.shape_cast %163 : vector<8xf32> to vector<8x1xf32>
    %165 = vector.broadcast %164 : vector<8x1xf32> to vector<8x8xf32>
    %166 = arith.divf %162, %165 : vector<8x8xf32>
    %cst_58 = arith.constant dense<0.000000e+00> : vector<8x8xf32>
    %167 = tpu.matmul %166, %154, %cst_58 {dimension_numbers = #tpu.dot_dimension_numbers<[1], [0], [0], [1], [0, 0, 1, 1], [], []>} : vector<8x8xf32>, vector<8x8xf32>, vector<8x8xf32> -> vector<8x8xf32>
    %168 = tpu.concatenate %119, %135, %151, %167 in 1 : vector<8x8xf32>, vector<8x8xf32>, vector<8x8xf32>, vector<8x8xf32> -> vector<8x32xf32>
    %169 = tpu.concatenate %103, %168 in 0 : vector<8x32xf32>, vector<8x32xf32> -> vector<16x32xf32>
    %c0_59 = arith.constant 0 : index
    %c0_60 = arith.constant 0 : index
    %c0_61 = arith.constant 0 : index
    %170 = vector.load %arg9[%c0_59, %c0_60, %c0_61] : memref<1x32x32xf32, #tpu.memory_space<vmem>>, vector<1x32x32xf32>
    %171 = vector.shape_cast %170 : vector<1x32x32xf32> to vector<32x32xf32>
    %cst_62 = arith.constant dense<0.000000e+00> : vector<16x32xf32>
    %172 = tpu.matmul %169, %171, %cst_62 {dimension_numbers = #tpu.dot_dimension_numbers<[1], [0], [0], [1], [0, 0, 1, 1], [], []>} : vector<16x32xf32>, vector<32x32xf32>, vector<16x32xf32> -> vector<16x32xf32>
    %c0_63 = arith.constant 0 : index
    %c0_64 = arith.constant 0 : index
    %c0_65 = arith.constant 0 : index
    %173 = vector.load %arg10[%c0_63, %c0_64, %c0_65] : memref<1x1x32xf32, #tpu.memory_space<vmem>>, vector<1x1x32xf32>
    %174 = vector.shape_cast %173 : vector<1x1x32xf32> to vector<1x32xf32>
    %175 = vector.broadcast %174 : vector<1x32xf32> to vector<16x32xf32>
    %176 = arith.addf %172, %175 : vector<16x32xf32>
    %177 = arith.addf %3, %176 : vector<16x32xf32>
    %c0_66 = arith.constant 0 : index
    %c0_67 = arith.constant 0 : index
    %c0_68 = arith.constant 0 : index
    %178 = vector.load %arg11[%c0_66, %c0_67, %c0_68] : memref<1x1x32xf32, #tpu.memory_space<vmem>>, vector<1x1x32xf32>
    %179 = vector.shape_cast %178 : vector<1x1x32xf32> to vector<1x32xf32>
    %c0_69 = arith.constant 0 : index
    %c0_70 = arith.constant 0 : index
    %c0_71 = arith.constant 0 : index
    %180 = vector.load %arg12[%c0_69, %c0_70, %c0_71] : memref<1x1x32xf32, #tpu.memory_space<vmem>>, vector<1x1x32xf32>
    %181 = vector.shape_cast %180 : vector<1x1x32xf32> to vector<1x32xf32>
    %cst_72 = arith.constant dense<0.000000e+00> : vector<16xf32>
    %182 = vector.multi_reduction <add>, %177, %cst_72 [1] : vector<16x32xf32> to vector<16xf32>
    %183 = vector.shape_cast %182 : vector<16xf32> to vector<16x1xf32>
    %cst_73 = arith.constant 3.200000e+01 : f32
    %184 = vector.broadcast %cst_73 : f32 to vector<16x1xf32>
    %185 = arith.divf %183, %184 : vector<16x1xf32>
    %186 = vector.broadcast %185 : vector<16x1xf32> to vector<16x32xf32>
    %187 = arith.subf %177, %186 : vector<16x32xf32>
    %188 = vector.broadcast %185 : vector<16x1xf32> to vector<16x32xf32>
    %189 = arith.subf %177, %188 : vector<16x32xf32>
    %190 = arith.mulf %187, %189 : vector<16x32xf32>
    %cst_74 = arith.constant dense<0.000000e+00> : vector<16xf32>
    %191 = vector.multi_reduction <add>, %190, %cst_74 [1] : vector<16x32xf32> to vector<16xf32>
    %192 = vector.shape_cast %191 : vector<16xf32> to vector<16x1xf32>
    %cst_75 = arith.constant 3.200000e+01 : f32
    %193 = vector.broadcast %cst_75 : f32 to vector<16x1xf32>
    %194 = arith.divf %192, %193 : vector<16x1xf32>
    %195 = vector.broadcast %185 : vector<16x1xf32> to vector<16x32xf32>
    %196 = arith.subf %177, %195 : vector<16x32xf32>
    %cst_76 = arith.constant 9.99999996E-13 : f32
    %197 = vector.broadcast %cst_76 : f32 to vector<16x1xf32>
    %198 = arith.addf %194, %197 : vector<16x1xf32>
    %199 = math.rsqrt %198 : vector<16x1xf32>
    %200 = vector.broadcast %199 : vector<16x1xf32> to vector<16x32xf32>
    %201 = arith.mulf %196, %200 : vector<16x32xf32>
    %202 = vector.broadcast %179 : vector<1x32xf32> to vector<16x32xf32>
    %203 = arith.mulf %201, %202 : vector<16x32xf32>
    %204 = vector.broadcast %181 : vector<1x32xf32> to vector<16x32xf32>
    %205 = arith.addf %203, %204 : vector<16x32xf32>
    %c0_77 = arith.constant 0 : index
    %c0_78 = arith.constant 0 : index
    %c0_79 = arith.constant 0 : index
    %206 = vector.load %arg13[%c0_77, %c0_78, %c0_79] : memref<1x32x64xf32, #tpu.memory_space<vmem>>, vector<1x32x64xf32>
    %207 = vector.shape_cast %206 : vector<1x32x64xf32> to vector<32x64xf32>
    %cst_80 = arith.constant dense<0.000000e+00> : vector<16x64xf32>
    %208 = tpu.matmul %205, %207, %cst_80 {dimension_numbers = #tpu.dot_dimension_numbers<[1], [0], [0], [1], [0, 0, 1, 1], [], []>} : vector<16x32xf32>, vector<32x64xf32>, vector<16x64xf32> -> vector<16x64xf32>
    %c0_81 = arith.constant 0 : index
    %c0_82 = arith.constant 0 : index
    %c0_83 = arith.constant 0 : index
    %209 = vector.load %arg14[%c0_81, %c0_82, %c0_83] : memref<1x1x64xf32, #tpu.memory_space<vmem>>, vector<1x1x64xf32>
    %210 = vector.shape_cast %209 : vector<1x1x64xf32> to vector<1x64xf32>
    %211 = vector.broadcast %210 : vector<1x64xf32> to vector<16x64xf32>
    %212 = arith.addf %208, %211 : vector<16x64xf32>
    %cst_84 = arith.constant 5.000000e-01 : f32
    %213 = vector.broadcast %cst_84 : f32 to vector<16x64xf32>
    %214 = arith.mulf %213, %212 : vector<16x64xf32>
    %cst_85 = arith.constant 4.471500e-02 : f32
    %215 = vector.broadcast %cst_85 : f32 to vector<16x64xf32>
    %216 = arith.mulf %215, %212 : vector<16x64xf32>
    %217 = arith.mulf %216, %212 : vector<16x64xf32>
    %218 = arith.mulf %217, %212 : vector<16x64xf32>
    %219 = arith.addf %212, %218 : vector<16x64xf32>
    %cst_86 = arith.constant 0.797884583 : f32
    %220 = vector.broadcast %cst_86 : f32 to vector<16x64xf32>
    %221 = arith.mulf %220, %219 : vector<16x64xf32>
    %222 = math.tanh %221 : vector<16x64xf32>
    %cst_87 = arith.constant 1.000000e+00 : f32
    %223 = vector.broadcast %cst_87 : f32 to vector<16x64xf32>
    %224 = arith.addf %223, %222 : vector<16x64xf32>
    %225 = arith.mulf %214, %224 : vector<16x64xf32>
    %c0_88 = arith.constant 0 : index
    %c0_89 = arith.constant 0 : index
    %c0_90 = arith.constant 0 : index
    %226 = vector.load %arg15[%c0_88, %c0_89, %c0_90] : memref<1x64x32xf32, #tpu.memory_space<vmem>>, vector<1x64x32xf32>
    %227 = vector.shape_cast %226 : vector<1x64x32xf32> to vector<64x32xf32>
    %cst_91 = arith.constant dense<0.000000e+00> : vector<16x32xf32>
    %228 = tpu.matmul %225, %227, %cst_91 {dimension_numbers = #tpu.dot_dimension_numbers<[1], [0], [0], [1], [0, 0, 1, 1], [], []>} : vector<16x64xf32>, vector<64x32xf32>, vector<16x32xf32> -> vector<16x32xf32>
    %c0_92 = arith.constant 0 : index
    %c0_93 = arith.constant 0 : index
    %c0_94 = arith.constant 0 : index
    %229 = vector.load %arg16[%c0_92, %c0_93, %c0_94] : memref<1x1x32xf32, #tpu.memory_space<vmem>>, vector<1x1x32xf32>
    %230 = vector.shape_cast %229 : vector<1x1x32xf32> to vector<1x32xf32>
    %231 = vector.broadcast %230 : vector<1x32xf32> to vector<16x32xf32>
    %232 = arith.addf %228, %231 : vector<16x32xf32>
    %233 = arith.addf %177, %232 : vector<16x32xf32>
    %c0_95 = arith.constant 0 : index
    %c0_96 = arith.constant 0 : index
    %234 = vector.load %arg18[%c0_95, %c0_96] : memref<16x32xf32, #tpu.memory_space<vmem>>, vector<16x32xf32>
    tpu.vector_store %arg18[%c0_95, %c0_96], %233 {strides = array<i32>} : memref<16x32xf32, #tpu.memory_space<vmem>>, vector<16x32xf32>,
    %c1_i32 = arith.constant 1 : i32
    %235 = arith.cmpi eq, %arg0, %c1_i32 : i32
    %236 = arith.extui %235 : i1 to i32
    %c0_i32_97 = arith.constant 0 : i32
    %237 = arith.cmpi ne, %236, %c0_i32_97 : i32
    scf.if %237 {
      %238 = vector.extract_strided_slice %233 {offsets = [0, 0], sizes = [8, 32], strides = [1, 1]} : vector<16x32xf32> to vector<8x32xf32>
      %cst_98 = arith.constant dense<0.000000e+00> : vector<32xf32>
      %239 = vector.multi_reduction <add>, %238, %cst_98 [0] : vector<8x32xf32> to vector<32xf32>
      %240 = vector.shape_cast %239 : vector<32xf32> to vector<1x32xf32>
      %cst_99 = arith.constant 8.000000e+00 : f32
      %241 = vector.broadcast %cst_99 : f32 to vector<1x32xf32>
      %242 = arith.divf %240, %241 : vector<1x32xf32>
      %243 = vector.extract_strided_slice %233 {offsets = [8, 0], sizes = [8, 32], strides = [1, 1]} : vector<16x32xf32> to vector<8x32xf32>
      %cst_100 = arith.constant dense<0.000000e+00> : vector<32xf32>
      %244 = vector.multi_reduction <add>, %243, %cst_100 [0] : vector<8x32xf32> to vector<32xf32>
      %245 = vector.shape_cast %244 : vector<32xf32> to vector<1x32xf32>
      %cst_101 = arith.constant 8.000000e+00 : f32
      %246 = vector.broadcast %cst_101 : f32 to vector<1x32xf32>
      %247 = arith.divf %245, %246 : vector<1x32xf32>
      %248 = tpu.concatenate %242, %247 in 0 : vector<1x32xf32>, vector<1x32xf32> -> vector<2x32xf32>
      %c0_102 = arith.constant 0 : index
      %c0_103 = arith.constant 0 : index
      %249 = vector.load %arg17[%c0_102, %c0_103] : memref<2x32xf32, #tpu.memory_space<vmem>>, vector<2x32xf32>
      tpu.vector_store %arg17[%c0_102, %c0_103], %248 {strides = array<i32>} : memref<2x32xf32, #tpu.memory_space<vmem>>, vector<2x32xf32>,
    } else {
    }
    return
  }
  func.func @transform_0(%arg0: i32) -> (i32, i32) {
    %c0_i32 = arith.constant 0 : i32
    %c0_i32_0 = arith.constant 0 : i32
    %c0_i32_1 = arith.constant 0 : i32
    return %c0_i32, %c0_i32_0 : i32, i32
  }
  func.func @transform_1(%arg0: i32) -> (i32, i32) {
    %c0_i32 = arith.constant 0 : i32
    %c0_i32_0 = arith.constant 0 : i32
    %c0_i32_1 = arith.constant 0 : i32
    return %c0_i32, %c0_i32_0 : i32, i32
  }
  func.func @transform_2(%arg0: i32) -> (i32, i32) {
    %c0_i32 = arith.constant 0 : i32
    %c0_i32_0 = arith.constant 0 : i32
    %c0_i32_1 = arith.constant 0 : i32
    return %c0_i32, %c0_i32_0 : i32, i32
  }
  func.func @transform_3(%arg0: i32) -> (i32, i32) {
    %c0_i32 = arith.constant 0 : i32
    %c0_i32_0 = arith.constant 0 : i32
    %c0_i32_1 = arith.constant 0 : i32
    return %c0_i32, %c0_i32_0 : i32, i32
  }
  func.func @transform_4(%arg0: i32) -> (i32, i32, i32) {
    %c0_i32 = arith.constant 0 : i32
    %c0_i32_0 = arith.constant 0 : i32
    %c0_i32_1 = arith.constant 0 : i32
    return %arg0, %c0_i32, %c0_i32_0 : i32, i32, i32
  }
  func.func @transform_5(%arg0: i32) -> (i32, i32, i32) {
    %c0_i32 = arith.constant 0 : i32
    %c0_i32_0 = arith.constant 0 : i32
    %c0_i32_1 = arith.constant 0 : i32
    return %arg0, %c0_i32, %c0_i32_0 : i32, i32, i32
  }
  func.func @transform_6(%arg0: i32) -> (i32, i32, i32) {
    %c0_i32 = arith.constant 0 : i32
    %c0_i32_0 = arith.constant 0 : i32
    %c0_i32_1 = arith.constant 0 : i32
    return %arg0, %c0_i32, %c0_i32_0 : i32, i32, i32
  }
  func.func @transform_7(%arg0: i32) -> (i32, i32, i32) {
    %c0_i32 = arith.constant 0 : i32
    %c0_i32_0 = arith.constant 0 : i32
    %c0_i32_1 = arith.constant 0 : i32
    return %arg0, %c0_i32, %c0_i32_0 : i32, i32, i32
  }
  func.func @transform_8(%arg0: i32) -> (i32, i32, i32) {
    %c0_i32 = arith.constant 0 : i32
    %c0_i32_0 = arith.constant 0 : i32
    %c0_i32_1 = arith.constant 0 : i32
    return %arg0, %c0_i32, %c0_i32_0 : i32, i32, i32
  }
  func.func @transform_9(%arg0: i32) -> (i32, i32, i32) {
    %c0_i32 = arith.constant 0 : i32
    %c0_i32_0 = arith.constant 0 : i32
    %c0_i32_1 = arith.constant 0 : i32
    return %arg0, %c0_i32, %c0_i32_0 : i32, i32, i32
  }
  func.func @transform_10(%arg0: i32) -> (i32, i32, i32) {
    %c0_i32 = arith.constant 0 : i32
    %c0_i32_0 = arith.constant 0 : i32
    %c0_i32_1 = arith.constant 0 : i32
    return %arg0, %c0_i32, %c0_i32_0 : i32, i32, i32
  }
  func.func @transform_11(%arg0: i32) -> (i32, i32, i32) {
    %c0_i32 = arith.constant 0 : i32
    %c0_i32_0 = arith.constant 0 : i32
    %c0_i32_1 = arith.constant 0 : i32
    return %arg0, %c0_i32, %c0_i32_0 : i32, i32, i32
  }
  func.func @transform_12(%arg0: i32) -> (i32, i32, i32) {
    %c0_i32 = arith.constant 0 : i32
    %c0_i32_0 = arith.constant 0 : i32
    %c0_i32_1 = arith.constant 0 : i32
    return %arg0, %c0_i32, %c0_i32_0 : i32, i32, i32
  }
  func.func @transform_13(%arg0: i32) -> (i32, i32, i32) {
    %c0_i32 = arith.constant 0 : i32
    %c0_i32_0 = arith.constant 0 : i32
    %c0_i32_1 = arith.constant 0 : i32
    return %arg0, %c0_i32, %c0_i32_0 : i32, i32, i32
  }
  func.func @transform_14(%arg0: i32) -> (i32, i32, i32) {
    %c0_i32 = arith.constant 0 : i32
    %c0_i32_0 = arith.constant 0 : i32
    %c0_i32_1 = arith.constant 0 : i32
    return %arg0, %c0_i32, %c0_i32_0 : i32, i32, i32
  }
  func.func @transform_15(%arg0: i32) -> (i32, i32, i32) {
    %c0_i32 = arith.constant 0 : i32
    %c0_i32_0 = arith.constant 0 : i32
    %c0_i32_1 = arith.constant 0 : i32
    return %arg0, %c0_i32, %c0_i32_0 : i32, i32, i32
  }
  func.func @transform_16(%arg0: i32) -> (i32, i32) {
    %c0_i32 = arith.constant 0 : i32
    %c0_i32_0 = arith.constant 0 : i32
    %c0_i32_1 = arith.constant 0 : i32
    return %c0_i32, %c0_i32_0 : i32, i32
  }
}

</mosaic_0001>

<bundles_post_ra>
// kernel: video_encoder_forward.1
= control target key start
LH: loop header
LB: loop body
LE: loop exit
PB: predicated region body
PF: predicated region fallthrough
CT: control target
= control target key end

     0   :  { %s4101_s0 = inlined_call_operand.vmem [shape: f32[16,384], index: 0, kind: input, shape index: {}]   ;;  %s4102_s1 = inlined_call_operand.vmem [shape: f32[384,32], index: 1, kind: input, shape index: {}]   ;;  %s4103_s2 = inlined_call_operand.vmem [shape: f32[1,32], index: 2, kind: input, shape index: {}]   ;;  %s4104_s3 = inlined_call_operand.vmem [shape: f32[16,32], index: 3, kind: input, shape index: {}]   ;;  %s4105_s4 = inlined_call_operand.vmem [shape: f32[2,1,32], index: 4, kind: input, shape index: {}]   ;;  %s4106_s5 = inlined_call_operand.vmem [shape: f32[2,1,32], index: 5, kind: input, shape index: {}]   ;;  %s4107_s6 = inlined_call_operand.vmem [shape: f32[2,32,96], index: 6, kind: input, shape index: {}]   ;;  %s4108_s7 = inlined_call_operand.vmem [shape: f32[2,1,96], index: 7, kind: input, shape index: {}]   ;;  %s4109_s8 = inlined_call_operand.vmem [shape: f32[2,32,32], index: 8, kind: input, shape index: {}]   ;;  %s4110_s9 = inlined_call_operand.vmem [shape: f32[2,1,32], index: 9, kind: input, shape index: {}]   ;;  %s4111_s10 = inlined_call_operand.vmem [shape: f32[2,1,32], index: 10, kind: input, shape index: {}]   ;;  %s4112_s11 = inlined_call_operand.vmem [shape: f32[2,1,32], index: 11, kind: input, shape index: {}]   ;;  %s4113_s12 = inlined_call_operand.vmem [shape: f32[2,32,64], index: 12, kind: input, shape index: {}]   ;;  %s4114_s13 = inlined_call_operand.vmem [shape: f32[2,1,64], index: 13, kind: input, shape index: {}]   ;;  %s4115_s14 = inlined_call_operand.vmem [shape: f32[2,64,32], index: 14, kind: input, shape index: {}]   ;;  %s4116_s15 = inlined_call_operand.vmem [shape: f32[2,1,32], index: 15, kind: input, shape index: {}]   ;;  %s4117_s16 = inlined_call_operand.hbm [shape: f32[2,32], index: 16, kind: output, shape index: {}]  }
   0x1   :  { %4122 = sst [smem:[#allocation8_spill]] %s4101_s0 }
   0x2   :  { %4123 = sst [smem:[#allocation9_spill]] %s4105_s4 }
   0x3   :  { %4124 = sst [smem:[#allocation10_spill]] %s4106_s5 }
   0x4   :  { %4125 = sst [smem:[#allocation11_spill]] %s4107_s6 }
   0x5   :  { %4126 = sst [smem:[#allocation12_spill]] %s4109_s8 }
   0x6   :  { %4127 = sst [smem:[#allocation13_spill]] %s4117_s16 }
   0x7   :  { %21 = vsyncpa [#allocation4], 0  ;;  %s3594_s21 = smov 0  }
   0x8 LB: > { %4128 = sst [smem:[#allocation6_spill]] %s3490_s21  ;;  %s3600_s22 = sadd.s32 4294967295, %s3490_s21   ;;  %s3490_s21 = sphi %s3594_s21, %s27_s21  }
   0x9   : > { %p2932_p0 = scmp.ge.s32.totalorder %s3490_s21, 1  ;;  %p552_p1 = scmp.lt.s32.totalorder %s3490_s21, 3 }
   0xb   : > { %p553_p2 = pnand %p2932_p0, %p552_p1 }
   0xd   : > { %556 = sbr.rel (%p553_p2) target bundleno = 2906 (0xb5a), region = 84 }
  0x14   : > { %p636_p3 = scmp.lt.s32.totalorder %s3600_s22, 1  ;;  %s4131_s6 = sld [smem:[#allocation11_spill]] }
  0x15   : > { %s4132_s8 = sld [smem:[#allocation12_spill]]  ;;  %p2941_p4 = scmp.ne.s32.totalorder %s3600_s22, 0 }
  0x16   : > { %s3606_s23 = scalar_select %p636_p3, %s3600_s22, 1 }
  0x17   : > { %683 = sbr.rel (%p2941_p4) target bundleno = 284 (0x11c), region = 88  ;;  %v706_v0 = vld [vmem:[%s4102_s1 + $0x80] sm:$0xff] (!%p2941_p4)  ;;  %v707_v1 = vld [vmem:[%s4102_s1 + $0x88] sm:$0xff] (!%p2941_p4)  ;;  %v708_v5 = vld [vmem:[%s4102_s1 + $0x90] sm:$0xff] (!%p2941_p4)  ;;  %s4134_s17 = sld [smem:[#allocation8_spill]] (!%p2941_p4)  ;;  %vm899_vm0 = vcmask (!%p2941_p4), 261120  }
  0x18   : > { %s2988_s30 = sshll.u32 %s3606_s23, 5  ;;  %s660_s5 = scalar_lea.vmem %s4111_s10, %s3606_s23  ;;  %v690_v2 = vld [vmem:[%s4102_s1] sm:$0xff] (!%p2941_p4)  ;;  %v3275_v3 = vpack.c.bf16 (!%p2941_p4), %v707_v1, %v706_v0  ;;  %v691_v4 = vld [vmem:[%s4102_s1 + $0x8] sm:$0xff] (!%p2941_p4)  ;;  %v709_v6 = vld [vmem:[%s4102_s1 + $0x98] sm:$0xff] (!%p2941_p4) }
  0x19   : > { %s663_s18 = scalar_lea.vmem %s4112_s11, %s3606_s23  ;;  %s679_s0 = scalar_lea.vmem %s4116_s15, %s3606_s23  ;;  %v3277_v7 = vpack.c.bf16 (!%p2941_p4), %v691_v4, %v690_v2  ;;  %v3279_v8 = vpack.c.bf16 (!%p2941_p4), %v709_v6, %v708_v5  ;;  %v722_v9 = vld [vmem:[%s4102_s1 + $0x100] sm:$0xff] (!%p2941_p4)  ;;  %v723_v10 = vld [vmem:[%s4102_s1 + $0x108] sm:$0xff] (!%p2941_p4)  ;;  %v692_v11 = vld [vmem:[%s4102_s1 + $0x10] sm:$0xff] (!%p2941_p4) }
  0x1a   : > { %s3624_s24 = scalar_lea.vmem %s4131_s6, %s2988_s30  ;;  %s3646_s6 = scalar_lea.vmem %s4113_s12, %s2988_s30  ;;  %3276 = vmatprep.subr.bf16.mxu0 (!%p2941_p4), %v3275_v3  ;;  %v3307_v12 = vpack.c.bf16 (!%p2941_p4), %v723_v10, %v722_v9  ;;  %v693_v13 = vld [vmem:[%s4102_s1 + $0x18] sm:$0xff] (!%p2941_p4)  ;;  %v710_v14 = vld [vmem:[%s4102_s1 + $0xa0] sm:$0xff] (!%p2941_p4)  ;;  %v711_v15 = vld [vmem:[%s4102_s1 + $0xa8] sm:$0xff] (!%p2941_p4) }
  0x1b   : > { %s3629_s16 = scalar_lea.vmem %s4132_s8, %s2988_s30  ;;  %s671_s8 = scalar_lea.vmem %s4114_s13, %s3606_s23  ;;  %3278 = vmatpush3.bf16.msra.mxu0 (!%p2941_p4), %v3277_v7  ;;  %v3281_v16 = vpack.c.bf16 (!%p2941_p4), %v693_v13, %v692_v11  ;;  %v724_v17 = vld [vmem:[%s4102_s1 + $0x110] sm:$0xff] (!%p2941_p4)  ;;  %v725_v18 = vld [vmem:[%s4102_s1 + $0x118] sm:$0xff] (!%p2941_p4)  ;;  %v3283_v19 = vpack.c.bf16 (!%p2941_p4), %v711_v15, %v710_v14  ;;  %v694_v21 = vld [vmem:[%s4102_s1 + $0x20] sm:$0xff] (!%p2941_p4) }
  0x1c   : > { %4133 = sst [smem:[#allocation7_spill]] %s3629_s16  ;;  %s2991_s16 = sshll.u32 %s3606_s23, 6  ;;  %3280 = vmatprep.subr.bf16.mxu0 (!%p2941_p4), %v3279_v8  ;;  %3308 = vmatprep.subr.bf16.mxu1 (!%p2941_p4), %v3307_v12  ;;  %v3311_v20 = vpack.c.bf16 (!%p2941_p4), %v725_v18, %v724_v17  ;;  %v695_v22 = vld [vmem:[%s4102_s1 + $0x28] sm:$0xff] (!%p2941_p4)  ;;  %v712_v23 = vld [vmem:[%s4102_s1 + $0xb0] sm:$0xff] (!%p2941_p4)  ;;  %v713_v24 = vld [vmem:[%s4102_s1 + $0xb8] sm:$0xff] (!%p2941_p4) }
  0x1d   : > { %s3656_s27 = scalar_lea.vmem %s4115_s14, %s2991_s16  ;;  %3310 = vmatpush3.bf16.msra.mxu1 (!%p2941_p4), %v3307_v12  ;;  %v726_v25 = vld [vmem:[%s4102_s1 + $0x120] sm:$0xff] (!%p2941_p4)  ;;  %v727_v26 = vld [vmem:[%s4102_s1 + $0x128] sm:$0xff] (!%p2941_p4)  ;;  %v3285_v28 = vpack.c.bf16 (!%p2941_p4), %v695_v22, %v694_v21  ;;  %v728_v29 = vld [vmem:[%s4102_s1 + $0x130] sm:$0xff] (!%p2941_p4)  ;;  %v3287_v31 = vpack.c.bf16 (!%p2941_p4), %v713_v24, %v712_v23 }
  0x1e   : > { %3312 = vmatprep.subr.bf16.mxu1 %v3311_v20  ;;  %v3315_v27 = vpack.c.bf16 %v727_v26, %v726_v25  ;;  %v729_v30 = vld [vmem:[%s4102_s1 + $0x138] sm:$0xff]  ;;  %v696_v32 = vld [vmem:[%s4102_s1 + $0x30] sm:$0xff]  ;;  %v714_v34 = vld [vmem:[%s4102_s1 + $0xc0] sm:$0xff] }
  0x1f   : > { %3282 = vmatpush3.bf16.msra.mxu0 %v3281_v16  ;;  %v697_v33 = vld [vmem:[%s4102_s1 + $0x38] sm:$0xff]  ;;  %v715_v35 = vld [vmem:[%s4102_s1 + $0xc8] sm:$0xff]  ;;  %v3319_v36 = vpack.c.bf16 %v729_v30, %v728_v29  ;;  %v730_v38 = vld [vmem:[%s4102_s1 + $0x140] sm:$0xff] }
  0x20   : > { %3284 = vmatprep.subr.bf16.mxu0 %v3283_v19  ;;  %v3289_v37 = vpack.c.bf16 %v697_v33, %v696_v32  ;;  %v731_v39 = vld [vmem:[%s4102_s1 + $0x148] sm:$0xff]  ;;  %v3291_v40 = vpack.c.bf16 %v715_v35, %v714_v34  ;;  %v698_v41 = vld [vmem:[%s4102_s1 + $0x40] sm:$0xff]  ;;  %v716_v43 = vld [vmem:[%s4102_s1 + $0xd0] sm:$0xff] }
  0x21   : > { %3314 = vmatpush3.bf16.msra.mxu1 %v3311_v20  ;;  %v699_v42 = vld [vmem:[%s4102_s1 + $0x48] sm:$0xff]  ;;  %v717_v44 = vld [vmem:[%s4102_s1 + $0xd8] sm:$0xff]  ;;  %v3323_v45 = vpack.c.bf16 %v731_v39, %v730_v38  ;;  %v732_v48 = vld [vmem:[%s4102_s1 + $0x150] sm:$0xff] }
  0x22   : > { %3316 = vmatprep.subr.bf16.mxu1 %v3315_v27  ;;  %v685_v46 = vld [vmem:[%s4134_s17 + $0x8] sm:$0xff]  ;;  %v3293_v47 = vpack.c.bf16 %v699_v42, %v698_v41  ;;  %v733_v49 = vld [vmem:[%s4102_s1 + $0x158] sm:$0xff]  ;;  %v3295_v50 = vpack.c.bf16 %v717_v44, %v716_v43  ;;  %v700_v51 = vld [vmem:[%s4102_s1 + $0x50] sm:$0xff] }
  0x23   : > { %3286 = vmatpush3.bf16.msra.mxu0 %v3285_v28  ;;  %809 = vmatprep.mubr.f32.mxu0 %v685_v46  ;;  %v701_v52 = vld [vmem:[%s4102_s1 + $0x58] sm:$0xff]  ;;  %v686_v53 = vld [vmem:[%s4134_s17 + $0x10] sm:$0xff]  ;;  %v718_v54 = vld [vmem:[%s4102_s1 + $0xe0] sm:$0xff]  ;;  %v3327_v56 = vpack.c.bf16 %v733_v49, %v732_v48 }
  0x24   : > { %3288 = vmatprep.subr.bf16.mxu0 %v3287_v31  ;;  %v719_v55 = vld [vmem:[%s4102_s1 + $0xe8] sm:$0xff]  ;;  %3140 = vmatprep.mubr.f32.mxu1 %v686_v53  ;;  %v3297_v57 = vpack.c.bf16 %v701_v52, %v700_v51  ;;  %v734_v58 = vld [vmem:[%s4102_s1 + $0x160] sm:$0xff]  ;;  %v720_v63 = vld [vmem:[%s4102_s1 + $0xf0] sm:$0xff] }
  0x25   : > { %3318 = vmatpush3.bf16.msra.mxu1 %v3315_v27  ;;  %v735_v59 = vld [vmem:[%s4102_s1 + $0x168] sm:$0xff]  ;;  %v3299_v60 = vpack.c.bf16 %v719_v55, %v718_v54  ;;  %v702_v61 = vld [vmem:[%s4102_s1 + $0x60] sm:$0xff]  ;;  %v721_v0 = vld [vmem:[%s4102_s1 + $0xf8] sm:$0xff] }
  0x26   : > { %3320 = vmatprep.subr.bf16.mxu1 %v3319_v36  ;;  %v703_v62 = vld [vmem:[%s4102_s1 + $0x68] sm:$0xff]  ;;  %v3331_v1 = vpack.c.bf16 %v735_v59, %v734_v58  ;;  %v736_v3 = vld [vmem:[%s4102_s1 + $0x170] sm:$0xff]  ;;  %v737_v4 = vld [vmem:[%s4102_s1 + $0x178] sm:$0xff]  ;;  %v3303_v5 = vpack.c.bf16 %v721_v0, %v720_v63 }
  0x27   : > { %3290 = vmatpush3.bf16.msra.mxu0 %v3289_v37  ;;  %v3301_v2 = vpack.c.bf16 %v703_v62, %v702_v61  ;;  %v704_v6 = vld [vmem:[%s4102_s1 + $0x70] sm:$0xff]  ;;  %v705_v7 = vld [vmem:[%s4102_s1 + $0x78] sm:$0xff]  ;;  %v3335_v8 = vpack.c.bf16 %v737_v4, %v736_v3  ;;  %v684_v10 = vld [vmem:[%s4134_s17] sm:$0xff] }
  0x28   : > { %3292 = vmatprep.subr.bf16.mxu0 %v3291_v40  ;;  %v3305_v9 = vpack.c.bf16 %v705_v7, %v704_v6  ;;  %v688_v11 = vld [vmem:[%s4134_s17 + $0x20] sm:$0xff]  ;;  %v689_v12 = vld [vmem:[%s4134_s17 + $0x28] sm:$0xff]  ;;  %v687_v13 = vld [vmem:[%s4134_s17 + $0x18] sm:$0xff] }
  0x29   : > { %3322 = vmatpush3.bf16.msra.mxu1 %v3319_v36  ;;  %v2942_v16 = vld [vmem:[%s4103_s2] ss:$0 sm:$0xff]  ;;  %v896_v28 = vld [vmem:[%s4104_s3 + $0x8] sm:$0xff] }
  0x2a   : > { %3324 = vmatprep.subr.bf16.mxu1 %v3323_v45  ;;  %v895_v23 = vld [vmem:[%s4104_s3] sm:$0xff] }
  0x2b   : > { %3294 = vmatpush3.bf16.msra.mxu0 %v3293_v47 }
  0x2c   : > { %3296 = vmatprep.subr.bf16.mxu0 %v3295_v50 }
  0x2d   : > { %3326 = vmatpush3.bf16.msra.mxu1 %v3323_v45 }
  0x2e   : > { %3328 = vmatprep.subr.bf16.mxu1 %v3327_v56 }
  0x2f   : > { %3298 = vmatpush3.bf16.msra.mxu0 %v3297_v57 }
  0x30   : > { %3300 = vmatprep.subr.bf16.mxu0 %v3299_v60 }
  0x31   : > { %3330 = vmatpush3.bf16.msra.mxu1 %v3327_v56 }
  0x32   : > { %3332 = vmatprep.subr.bf16.mxu1 %v3331_v1 }
  0x33   : > { %3302 = vmatpush3.bf16.msra.mxu0 %v3301_v2 }
  0x34   : > { %3304 = vmatprep.subr.bf16.mxu0 %v3303_v5 }
  0x35   : > { %3334 = vmatpush3.bf16.msra.mxu1 %v3331_v1 }
  0x36   : > { %3336 = vmatprep.subr.bf16.mxu1 %v3335_v8 }
  0x37   : > { %3306 = vmatpush3.bf16.msra.mxu0 %v3305_v9 }
  0x39   : > { %3338 = vmatpush3.bf16.msra.mxu1 %v3335_v8 }
  0x3a   : > { %810 = vmatmul.mubr.f32.vlgmr.msra.gmra.mrb[0].mxu0 %v684_v10 }
  0x3b   : > { %814 = vmatprep.mubr.f32.mxu0 %v688_v11 }
  0x3c   : > { %3141 = vmatmul.mubr.f32.vlgmr.msra.gmra.mrb[0].mxu1 %v689_v12 }
  0x3e   : > { %815 = vmatmul.mubr.f32.gmra.mrb[2].mxu0 %v687_v13 }
 0x10d   : > { %v3024_v14 = vpop.f32.mrb[0].mxu0 }
 0x10e   : > { %v3025_v15 = vpop.f32.mrb[1].mxu0 }
 0x10f   : > { %v3026_v17 = vadd.f32 %v3025_v15, %v3024_v14  ;;  %v3142_v18 = vpop.f32.mrb[0].mxu1 }
 0x110   : > { %v886_v19 = vpop.f32.mrb[1].mxu1 }
 0x111   : > { %v3027_v20 = vpop.f32.mrb[2].mxu0  ;;  %v812_v21 = vadd.f32 %v3026_v17, %v2942_v16 }
 0x112   : > { %v3028_v22 = vpop.f32.mrb[3].mxu0 }
 0x113   : > { %v3029_v24 = vadd.f32 %v3028_v22, %v3027_v20  ;;  %v887_v25 = vadd.f32 %v886_v19, %v812_v21 }
 0x115   : > { %v817_v26 = vadd.f32 %v3029_v24, %v2942_v16  ;;  %v897_v27 = vadd.f32 %v895_v23, %v887_v25 }
 0x117   : > { %v892_v29 = vadd.f32 %v3142_v18, %v817_v26  ;;  %900 = vst.msk [vmem:[#allocation2] sm:$0xff] %vm899_vm0, %v897_v27 }
 0x119   : > { %v898_v30 = vadd.f32 %v896_v28, %v892_v29 }
 0x11b   : > { %901 = vst.msk [vmem:[#allocation2 + $0x8] sm:$0xff] %vm899_vm0, %v898_v30 }
 0x11c PF: > { %vm906_vm1 = vcmask 261120   ;;  %v950_v45 = vld [vmem:[%s3624_s24] sm:$0xff]  ;;  %v951_v46 = vld [vmem:[%s3624_s24 + $0x8] sm:$0xff]  ;;  %v952_v47 = vld [vmem:[%s3624_s24 + $0x10] sm:$0xff]  ;;  %s4135_s30 = sld [smem:[#allocation9_spill]]  ;;  %s4137_s21 = sld [smem:[#allocation10_spill]] }
 0x11d   : > { %v3339_v48 = vpack.c.bf16 %v951_v46, %v950_v45  ;;  %v953_v49 = vld [vmem:[%s3624_s24 + $0x18] sm:$0xff]  ;;  %v3492_v3 = vmov 0.0   ;;  %vm3493_vm2 = vmmov 0   ;;  %s4139_s26 = scalar_lea.vmem %s4108_s7, %s3606_s23  ;;  %s3494_s29 = smov 88   ;;  %vm1045_vm3 = vcmask 64512  }
 0x11e   : > { %v3834_v31 = vld [vmem:[#allocation2] sm:$0xff]  ;;  %v3343_v50 = vpack.c.bf16 %v953_v49, %v952_v47  ;;  %3164 = vmatprep.subr.mxu0 %v3492_v3  ;;  %3166 = vmatprep.mubr.msk.f32.mxu0 %vm3493_vm2, %v3492_v3  ;;  %s3495_s28 = smov 96   ;;  %s3498_s24 = smov 80   ;;  %vm1719_vm4 = vcmask 130048   ;;  %vm1721_vm5 = vcmask 195584   ;;  %vm2664_vm6 = vcmask 523264  }
 0x11f   : > { %v907_v33 = vsel %vm906_vm1, %v3834_v31, 0.0  ;;  %3340 = vmatprep.subr.bf16.mxu1 %v3339_v48  ;;  %v2945_v4 = vld [vmem:[%s4139_s26] ss:$0 sm:$0xff]  ;;  %s3499_s20 = smov 104   ;;  %s3502_s16 = smov 48  }
 0x120   : > { %908 = vadd.xlane.f32.xlu0 %v907_v33  ;;  %3342 = vmatpush3.bf16.msra.mxu1 %v3339_v48  ;;  %s3503_s4 = smov 40   ;;  %s3504_s26 = smov 56  }
 0x121   : > { %3344 = vmatprep.subr.bf16.mxu1 %v3343_v50  ;;  %p2983_p5 = scmp.ne.s32.totalorder %s3600_s22, 1 }
 0x122   : > { %v3836_v32 = vld [vmem:[#allocation2 + $0x8] sm:$0xff]  ;;  %s4136_s19 = scalar_lea.vmem %s4135_s30, %s3606_s23  ;;  %s4138_s25 = scalar_lea.vmem %s4137_s21, %s3606_s23  ;;  %vm2771_vm7 = vcmask (!%p2983_p5), 1040384   ;;  %vm2773_vm8 = vcmask (!%p2983_p5), 254976  }
 0x123   : > { %v910_v34 = vsel %vm906_vm1, %v3836_v32, 0.0  ;;  %v2943_v58 = vld [vmem:[%s4136_s19] ss:$0 sm:$0xff]  ;;  %s3496_s30 = smov 120   ;;  %s3497_s19 = smov 112  }
 0x124   : > { %911 = vadd.xlane.f32.xlu0 %v910_v34  ;;  %3346 = vmatpush3.bf16.msra.mxu1 %v3343_v50  ;;  %v2944_v60 = vld [vmem:[%s4138_s25] ss:$0 sm:$0xff]  ;;  %s3500_s21 = smov 72   ;;  %s3501_s25 = smov 64  }
 0x125   : > { %3154 = vmatprep.subr.mxu1 %v3492_v3 }
 0x1ad   : > { %v909_v35 = vpop.xlane.xlu0 %908 }
 0x1ae   : > { %v914_v36 = vmul.f32 0.03125, %v909_v35 }
 0x1b0   : > { %v916_v37 = vsub.f32 %v3834_v31, %v914_v36 }
 0x1b1   : > { %v912_v38 = vpop.xlane.xlu0 %911 }
 0x1b2   : > { %v915_v39 = vmul.f32 0.03125, %v912_v38  ;;  %v918_v40 = vmul.f32 %v916_v37, %v916_v37 }
 0x1b4   : > { %v917_v41 = vsub.f32 %v3836_v32, %v915_v39  ;;  %v920_v42 = vsel %vm906_vm1, %v918_v40, 0.0 }
 0x1b5   : > { %921 = vadd.xlane.f32.xlu1 %v920_v42 }
 0x1b6   : > { %v919_v43 = vmul.f32 %v917_v41, %v917_v41 }
 0x1b8   : > { %v923_v44 = vsel %vm906_vm1, %v919_v43, 0.0 }
 0x1b9   : > { %924 = vadd.xlane.f32.xlu1 %v923_v44 }
 0x242   : > { %v922_v51 = vpop.xlane.xlu1 %921 }
 0x243   : > { %v926_v52 = vmul.f32 0.03125, %v922_v51 }
 0x245   : > { %v928_v53 = vadd.f32 1e-12, %v926_v52 }
 0x246   : > { %v925_v54 = vpop.xlane.xlu1 %924 }
 0x247   : > { %3410 = vrsqrt.f32 %v928_v53  ;;  %v927_v55 = vmul.f32 0.03125, %v925_v54 }
 0x249   : > { %v929_v56 = vadd.f32 1e-12, %v927_v55 }
 0x24b   : > { %3412 = vrsqrt.f32 %v929_v56 }
 0x251   : > { %v3411_v57 = vpop.eup %3410 }
 0x252   : > { %v932_v59 = vmul.f32 %v3411_v57, %v916_v37 }
 0x254   : > { %v940_v61 = vmul.f32 %v2943_v58, %v932_v59 }
 0x255   : > { %v3413_v62 = vpop.eup %3412 }
 0x256   : > { %v933_v63 = vmul.f32 %v3413_v62, %v917_v41  ;;  %v948_v0 = vadd.f32 %v2944_v60, %v940_v61 }
 0x258   : > { %v941_v1 = vmul.f32 %v2943_v58, %v933_v63  ;;  %3151 = vmatprep.mubr.msk.f32.mxu1 %vm906_vm1, %v948_v0 }
 0x25a   : > { %v949_v2 = vadd.f32 %v2944_v60, %v941_v1 }
 0x25c   : > { %3152 = vmatmul.mubr.msk.f32.vlgmr.msra.gmra.mrb[0].mxu1 %vm906_vm1, %v949_v2 }
 0x25d   : > { %3156 = vmatprep.mubr.msk.f32.mxu1 %vm3493_vm2, %v3492_v3 }
 0x32f   : > { %v3153_v5 = vpop.f32.mrb[0].mxu1 }
 0x330   : > { %v1033_v6 = vpop.f32.mrb[1].mxu1  ;;  %v3881_v8 = vadd.f32 %v3153_v5, %v2945_v4 }
 0x331   : > { %v3873_v7 = vadd.f32 %v2945_v4, %v1033_v6 }
 0x333   : > { %1210 = vrot.lane.b32.xlu1 %v3873_v7, %s3494_s29  ;;  %1043 = vrot.lane.b32.xlu0 %v3873_v7, %s3495_s28 }
 0x337   : > { %1208 = vrot.lane.b32.xlu1 %v3873_v7, %s3496_s30  ;;  %1374 = vrot.lane.b32.xlu0 %v3873_v7, %s3497_s19 }
 0x33b   : > { %1376 = vrot.lane.b32.xlu1 %v3873_v7, %s3498_s24  ;;  %1540 = vrot.lane.b32.xlu0 %v3873_v7, %s3499_s20 }
 0x33f   : > { %1542 = vrot.lane.b32.xlu1 %v3873_v7, %s3500_s21  ;;  %1890 = vrot.lane.b32.xlu0 %v3881_v8, %s3494_s29  ;;  %s4140_s29 = sld [smem:[#allocation7_spill]] }
 0x343   : > { %1724 = vrot.lane.b32.xlu1 %v3881_v8, %s3495_s28  ;;  %2056 = vrot.lane.b32.xlu0 %v3881_v8, %s3498_s24  ;;  %s3505_s28 = smov 8  }
 0x347   : > { %1888 = vrot.lane.b32.xlu1 %v3881_v8, %s3496_s30  ;;  %2222 = vrot.lane.b32.xlu0 %v3881_v8, %s3500_s21  ;;  %s3506_s30 = smov 16   ;;  %s4141_s21 = scalar_lea.vmem %s4110_s9, %s3606_s23 }
 0x34b   : > { %2054 = vrot.lane.b32.xlu1 %v3881_v8, %s3497_s19  ;;  %s3507_s19 = smov 24  }
 0x34f   : > { %2220 = vrot.lane.b32.xlu1 %v3881_v8, %s3499_s20 }
 0x3a5   : > { %v1211_v9 = vpop.permute.xlu1 %1210  ;;  %v1044_v10 = vpop.permute.xlu0 %1043 }
 0x3a6   : > { %3155 = vmatpush3.xpose.msk.msra.mxu1 %vm1045_vm3, %v1044_v10  ;;  %3165 = vmatpush3.xpose.msk.msra.mxu0 %vm1045_vm3, %v1211_v9 }
 0x3a7   : > { %3174 = vmatprep.subr.mxu0 %v3492_v3  ;;  %3159 = vmatprep.subr.mxu1 %v3492_v3 }
 0x3a9   : > { %v1209_v11 = vpop.permute.xlu1 %1208  ;;  %3157 = vmatmul.mubr.msk.f32.vlgmr.msra.gmra.mrb[2].mxu1 %vm1045_vm3, %v3873_v7  ;;  %v1375_v12 = vpop.permute.xlu0 %1374 }
 0x3aa   : > { %3167 = vmatmul.mubr.msk.f32.vlgmr.msra.gmra.mrb[0].mxu0 %vm1045_vm3, %v1209_v11  ;;  %3161 = vmatprep.mubr.msk.f32.mxu1 %vm3493_vm2, %v3492_v3 }
 0x3ab   : > { %3176 = vmatprep.mubr.msk.f32.mxu0 %vm3493_vm2, %v3492_v3 }
 0x3ad   : > { %v1377_v13 = vpop.permute.xlu1 %1376  ;;  %v1541_v14 = vpop.permute.xlu0 %1540 }
 0x3ae   : > { %3175 = vmatpush3.xpose.msk.msra.mxu0 %vm1045_vm3, %v1377_v13 }
 0x3af   : > { %3184 = vmatprep.subr.mxu0 %v3492_v3 }
 0x3b1   : > { %v1543_v15 = vpop.permute.xlu1 %1542  ;;  %3177 = vmatmul.mubr.msk.f32.vlgmr.msra.gmra.mrb[2].mxu0 %vm1045_vm3, %v1375_v12  ;;  %v1891_v16 = vpop.permute.xlu0 %1890 }
 0x3b2   : > { %3185 = vmatpush3.xpose.msk.msra.mxu0 %vm1045_vm3, %v1543_v15  ;;  %3186 = vmatprep.mubr.msk.f32.mxu0 %vm3493_vm2, %v3492_v3 }
 0x3b3   : > { %3194 = vmatprep.subr.mxu0 %v3492_v3 }
 0x3b5   : > { %v1725_v17 = vpop.permute.xlu1 %1724  ;;  %3187 = vmatmul.mubr.msk.f32.vlgmr.msra.gmra.mrb[4].mxu0 %vm1045_vm3, %v1541_v14  ;;  %v2057_v19 = vpop.permute.xlu0 %2056 }
 0x3b6   : > { %3195 = vmatpush3.xpose.msk.msra.mxu0 %vm1045_vm3, %v1725_v17  ;;  %3196 = vmatprep.mubr.msk.f32.mxu0 %vm3493_vm2, %v3492_v3 }
 0x3b7   : > { %3204 = vmatprep.subr.mxu0 %v3492_v3 }
 0x3b9   : > { %v1889_v18 = vpop.permute.xlu1 %1888  ;;  %3197 = vmatmul.mubr.msk.f32.vlgmr.msra.gmra.mrb[6].mxu0 %vm1045_vm3, %v3881_v8  ;;  %v2223_v21 = vpop.permute.xlu0 %2222 }
 0x3ba   : > { %3205 = vmatpush3.xpose.msk.msra.mxu0 %vm1045_vm3, %v1891_v16  ;;  %3206 = vmatprep.mubr.msk.f32.mxu0 %vm3493_vm2, %v3492_v3 }
 0x3bb   : > { %3214 = vmatprep.subr.mxu0 %v3492_v3 }
 0x3bd   : > { %3207 = vmatmul.mubr.msk.f32.vlgmr.msra.gmra.mrb[8].mxu0 %vm1045_vm3, %v1889_v18  ;;  %v2055_v20 = vpop.permute.xlu1 %2054 }
 0x3be   : > { %3215 = vmatpush3.xpose.msk.msra.mxu0 %vm1045_vm3, %v2057_v19  ;;  %3216 = vmatprep.mubr.msk.f32.mxu0 %vm3493_vm2, %v3492_v3 }
 0x3bf   : > { %3224 = vmatprep.subr.mxu0 %v3492_v3 }
 0x3c1   : > { %3217 = vmatmul.mubr.msk.f32.vlgmr.msra.gmra.mrb[10].mxu0 %vm1045_vm3, %v2055_v20  ;;  %v2221_v22 = vpop.permute.xlu1 %2220 }
 0x3c2   : > { %3225 = vmatpush3.xpose.msk.msra.mxu0 %vm1045_vm3, %v2223_v21  ;;  %3226 = vmatprep.mubr.msk.f32.mxu0 %vm3493_vm2, %v3492_v3 }
 0x3c5   : > { %3227 = vmatmul.mubr.msk.f32.vlgmr.msra.gmra.mrb[12].mxu0 %vm1045_vm3, %v2221_v22 }
 0x47c   : > { %v1116_v23 = vpop.f32.mrb[2].mxu1 }
 0x47d   : > { %v1120_v24 = vmul.f32 0.35355338, %v1116_v23  ;;  %v3158_v25 = vpop.f32.mrb[3].mxu1  ;;  %v1282_v26 = vpop.f32.mrb[0].mxu0 }
 0x47e   : > { %v1286_v27 = vmul.f32 0.35355338, %v1282_v26  ;;  %v3168_v28 = vpop.f32.mrb[1].mxu0 }
 0x47f   : > { %v1121_v29 = vsel %vm1045_vm3, %v1120_v24, -inf }
 0x480   : > { %1122 = vmax.xlane.f32.xlu0 %v1121_v29  ;;  %v1287_v30 = vsel %vm1045_vm3, %v1286_v27, -inf }
 0x481   : > { %1288 = vmax.xlane.f32.xlu1 %v1287_v30 }
 0x484   : > { %v1448_v33 = vpop.f32.mrb[2].mxu0 }
 0x485   : > { %v3932_v34 = vmul.f32 0.35355338, %v1448_v33  ;;  %v3178_v35 = vpop.f32.mrb[3].mxu0 }
 0x487   : > { %v1453_v36 = vsel %vm1045_vm3, %v3932_v34, -inf }
 0x488   : > { %1454 = vmax.xlane.f32.xlu0 %v1453_v36  ;;  %v1614_v37 = vpop.f32.mrb[4].mxu0 }
 0x489   : > { %v1618_v38 = vmul.f32 0.35355338, %v1614_v37  ;;  %v3188_v39 = vpop.f32.mrb[5].mxu0 }
 0x48b   : > { %v1619_v40 = vsel %vm1045_vm3, %v1618_v38, -inf }
 0x48c   : > { %1620 = vmax.xlane.f32.xlu0 %v1619_v40  ;;  %v1796_v41 = vpop.f32.mrb[6].mxu0 }
 0x48d   : > { %v1800_v42 = vmul.f32 0.35355338, %v1796_v41  ;;  %v3198_v43 = vpop.f32.mrb[7].mxu0 }
 0x48f   : > { %v1801_v44 = vsel %vm1045_vm3, %v1800_v42, -inf }
 0x490   : > { %1802 = vmax.xlane.f32.xlu0 %v1801_v44  ;;  %v1962_v45 = vpop.f32.mrb[8].mxu0 }
 0x491   : > { %v1966_v46 = vmul.f32 0.35355338, %v1962_v45  ;;  %v3208_v47 = vpop.f32.mrb[9].mxu0 }
 0x493   : > { %v1967_v48 = vsel %vm1045_vm3, %v1966_v46, -inf }
 0x494   : > { %1968 = vmax.xlane.f32.xlu1 %v1967_v48  ;;  %v2128_v49 = vpop.f32.mrb[10].mxu0 }
 0x495   : > { %v2132_v50 = vmul.f32 0.35355338, %v2128_v49  ;;  %v3218_v51 = vpop.f32.mrb[11].mxu0 }
 0x497   : > { %v2133_v52 = vsel %vm1045_vm3, %v2132_v50, -inf }
 0x498   : > { %2134 = vmax.xlane.f32.xlu0 %v2133_v52  ;;  %v2294_v53 = vpop.f32.mrb[12].mxu0 }
 0x499   : > { %v3228_v54 = vpop.f32.mrb[13].mxu0  ;;  %v2298_v55 = vmul.f32 0.35355338, %v2294_v53 }
 0x49b   : > { %v2299_v56 = vsel %vm1045_vm3, %v2298_v55, -inf }
 0x4a5   : > { %1132 = vrot.lane.b32.xlu1 %v3873_v7, %s3501_s25 }
 0x4c9   : > { %2300 = vmax.xlane.f32.xlu1 %v2299_v56 }
 0x4da   : > { %1464 = vrot.lane.b32.xlu1 %v3873_v7, %s3502_s16 }
 0x4de   : > { %1630 = vrot.lane.b32.xlu1 %v3873_v7, %s3503_s4 }
 0x4e2   : > { %1812 = vrot.lane.b32.xlu1 %v3881_v8, %s3501_s25 }
 0x50d   : > { %v1123_v57 = vpop.xlane.xlu0 %1122 }
 0x50e   : > { %v1124_v58 = vsub.f32 %v1120_v24, %v1123_v57  ;;  %v1289_v59 = vpop.xlane.xlu1 %1288 }
 0x50f   : > { %v1290_v60 = vsub.f32 %v1286_v27, %v1289_v59 }
 0x510   : > { %v1125_v61 = vmul.f32 1.442695, %v1124_v58 }
 0x511   : > { %v1291_v62 = vmul.f32 1.442695, %v1290_v60 }
 0x512   : > { %3414 = vpow2.f32 %v1125_v61 }
 0x513   : > { %3416 = vpow2.f32 %v1291_v62 }
 0x515   : > { %v1455_v63 = vpop.xlane.xlu0 %1454 }
 0x516   : > { %v1456_v14 = vsub.f32 %v3932_v34, %v1455_v63 }
 0x518   : > { %v1457_v16 = vmul.f32 1.442695, %v1456_v14 }
 0x519   : > { %v1621_v0 = vpop.xlane.xlu0 %1620 }
 0x51a   : > { %v1622_v1 = vsub.f32 %v1618_v38, %v1621_v0 }
 0x51c   : > { %v3415_v2 = vpop.eup %3414  ;;  %v1623_v4 = vmul.f32 1.442695, %v1622_v1 }
 0x51d   : > { %v3947_v5 = vpop.eup %3416  ;;  %v1127_v6 = vsel %vm1045_vm3, %v3415_v2, 0.0  ;;  %v1803_v15 = vpop.xlane.xlu0 %1802 }
 0x51e   : > { %3418 = vpow2.f32 %v1623_v4  ;;  %1128 = vadd.xlane.f32.xlu0 %v1127_v6  ;;  %v1293_v9 = vsel %vm1045_vm3, %v3947_v5, 0.0  ;;  %v1804_v17 = vsub.f32 %v1800_v42, %v1803_v15 }
 0x51f   : > { %1294 = vadd.xlane.f32.xlu1 %v1293_v9  ;;  %3420 = vpow2.f32 %v1457_v16  ;;  %v2404_v16 = vld [vmem:[%s4140_s29 + $0x18] sm:$0xff] }
 0x520   : > { %v1805_v19 = vmul.f32 1.442695, %v1804_v17 }
 0x521   : > { %v1969_v10 = vpop.xlane.xlu1 %1968 }
 0x522   : > { %3422 = vpow2.f32 %v1805_v19  ;;  %v1970_v21 = vsub.f32 %v1966_v46, %v1969_v10 }
 0x524   : > { %v1971_v23 = vmul.f32 1.442695, %v1970_v21 }
 0x525   : > { %v1133_v11 = vpop.permute.xlu1 %1132  ;;  %v2135_v18 = vpop.xlane.xlu0 %2134 }
 0x526   : > { %3160 = vmatpush3.msra.mxu1 %v1133_v11  ;;  %v2136_v20 = vsub.f32 %v2132_v50, %v2135_v18  ;;  %v2401_v11 = vld [vmem:[%s4140_s29] sm:$0xff] }
 0x527   : > { %3169 = vmatprep.subr.mxu1 %v3492_v3 }
 0x528   : > { %v3953_v12 = vpop.eup %3418  ;;  %v2137_v22 = vmul.f32 1.442695, %v2136_v20 }
 0x529   : > { %v1625_v13 = vsel %vm1045_vm3, %v3953_v12, 0.0  ;;  %v3421_v24 = vpop.eup %3420 }
 0x52a   : > { %1626 = vadd.xlane.f32.xlu1 %v1625_v13  ;;  %3424 = vpow2.f32 %v2137_v22 }
 0x52b   : > { %3426 = vpow2.f32 %v1971_v23 }
 0x52c   : > { %v3423_v25 = vpop.eup %3422 }
 0x52d   : > { %v1807_v27 = vsel %vm1045_vm3, %v3423_v25, 0.0 }
 0x534   : > { %1298 = vrot.lane.b32.xlu0 %v3873_v7, %s3504_s26  ;;  %v1459_v7 = vsel %vm1045_vm3, %v3421_v24, 0.0  ;;  %v3962_v28 = vpop.eup %3424 }
 0x535   : > { %v2139_v33 = vsel %vm1045_vm3, %v3962_v28, 0.0  ;;  %v3427_v34 = vpop.eup %3426 }
 0x536   : > { %v1973_v35 = vsel %vm1045_vm3, %v3427_v34, 0.0 }
 0x53b   : > { %1978 = vrot.lane.b32.xlu1 %v3881_v8, %s3504_s26 }
 0x553   : > { %1460 = vadd.xlane.f32.xlu0 %v1459_v7 }
 0x556   : > { %v2301_v26 = vpop.xlane.xlu1 %2300 }
 0x557   : > { %v2302_v29 = vsub.f32 %v2298_v55, %v2301_v26  ;;  %1808 = vadd.xlane.f32.xlu0 %v1807_v27 }
 0x559   : > { %v2303_v30 = vmul.f32 1.442695, %v2302_v29 }
 0x55a   : > { %v1465_v38 = vpop.permute.xlu1 %1464 }
 0x55b   : > { %3428 = vpow2.f32 %v2303_v30  ;;  %2140 = vadd.xlane.f32.xlu0 %v2139_v33 }
 0x55e   : > { %v1631_v39 = vpop.permute.xlu1 %1630 }
 0x55f   : > { %1974 = vadd.xlane.f32.xlu1 %v1973_v35 }
 0x562   : > { %v1813_v40 = vpop.permute.xlu1 %1812 }
 0x565   : > { %v3967_v36 = vpop.eup %3428 }
 0x566   : > { %v2305_v37 = vsel %vm1045_vm3, %v3967_v36, 0.0 }
 0x567   : > { %2306 = vadd.xlane.f32.xlu0 %v2305_v37 }
 0x570   : > { %2310 = vrot.lane.b32.xlu1 %v3881_v8, %s3503_s4 }
 0x57d   : > { %2144 = vrot.lane.b32.xlu0 %v3881_v8, %s3502_s16 }
 0x5ab   : > { %v1129_v41 = vpop.xlane.xlu0 %1128 }
 0x5ac   : > { %3430 = vrcp.f32 %v1129_v41  ;;  %v1295_v42 = vpop.xlane.xlu1 %1294  ;;  %v2972_v41 = vld [vmem:[%s4141_s21] ss:$0 sm:$0xff] }
 0x5ad   : > { %3432 = vrcp.f32 %v1295_v42 }
 0x5af   : > { %v1299_v46 = vpop.permute.xlu0 %1298 }
 0x5b6   : > { %v3431_v43 = vpop.eup %3430 }
 0x5b7   : > { %v1131_v44 = vmul.f32 %v3431_v43, %v3415_v2  ;;  %v3433_v45 = vpop.eup %3432  ;;  %v1627_v8 = vpop.xlane.xlu1 %1626 }
 0x5b8   : > { %v1297_v47 = vmul.f32 %v3433_v45, %v3947_v5 }
 0x5b9   : > { %3162 = vmatmul.mubr.msk.f32.vlgmr.msra.gmra.mrb[4].mxu1 %vm1045_vm3, %v1131_v44 }
 0x5ba   : > { %3170 = vmatpush3.msra.mxu1 %v1299_v46  ;;  %3171 = vmatprep.mubr.msk.f32.mxu1 %vm3493_vm2, %v3492_v3 }
 0x5bb   : > { %3179 = vmatprep.subr.mxu1 %v3492_v3  ;;  %v1979_v50 = vpop.permute.xlu1 %1978 }
 0x5bd   : > { %3172 = vmatmul.mubr.msk.f32.vlgmr.msra.gmra.mrb[6].mxu1 %vm1045_vm3, %v1297_v47 }
 0x5be   : > { %3180 = vmatpush3.msra.mxu1 %v1465_v38  ;;  %3181 = vmatprep.mubr.msk.f32.mxu1 %vm3493_vm2, %v3492_v3 }
 0x5bf   : > { %3189 = vmatprep.subr.mxu1 %v3492_v3 }
 0x5e0   : > { %v1461_v48 = vpop.xlane.xlu0 %1460 }
 0x5e1   : > { %3434 = vrcp.f32 %v1461_v48 }
 0x5e2   : > { %3436 = vrcp.f32 %v1627_v8 }
 0x5e4   : > { %v1809_v49 = vpop.xlane.xlu0 %1808 }
 0x5e5   : > { %3438 = vrcp.f32 %v1809_v49 }
 0x5e8   : > { %v2141_v53 = vpop.xlane.xlu0 %2140 }
 0x5eb   : > { %v3435_v51 = vpop.eup %3434 }
 0x5ec   : > { %v1463_v52 = vmul.f32 %v3435_v51, %v3421_v24  ;;  %v1975_v54 = vpop.xlane.xlu1 %1974  ;;  %v3437_v55 = vpop.eup %3436 }
 0x5ed   : > { %3440 = vrcp.f32 %v1975_v54  ;;  %v1629_v56 = vmul.f32 %v3437_v55, %v3953_v12  ;;  %v2402_v12 = vld [vmem:[%s4140_s29 + $0x8] sm:$0xff] }
 0x5ee   : > { %3182 = vmatmul.mubr.msk.f32.vlgmr.msra.gmra.mrb[8].mxu1 %vm1045_vm3, %v1463_v52  ;;  %3442 = vrcp.f32 %v2141_v53  ;;  %v3347_v14 = vpack.c.bf16 %v2402_v12, %v2401_v11  ;;  %v2976_v11 = vld [vmem:[%s663_s18] ss:$0 sm:$0xff] }
 0x5ef   : > { %3190 = vmatpush3.msra.mxu1 %v1631_v39  ;;  %3191 = vmatprep.mubr.msk.f32.mxu1 %vm3493_vm2, %v3492_v3  ;;  %v3439_v57 = vpop.eup %3438 }
 0x5f0   : > { %3199 = vmatprep.subr.mxu1 %v3492_v3  ;;  %v1811_v58 = vmul.f32 %v3439_v57, %v3423_v25  ;;  %v2311_v1 = vpop.permute.xlu1 %2310  ;;  %3348 = vmatprep.subr.bf16.mxu0 %v3347_v14  ;;  %v2539_v57 = vld [vmem:[%s3646_s6] sm:$0xff] }
 0x5f1   : > { %3350 = vmatpush3.bf16.msra.mxu0 %v3347_v14 }
 0x5f2   : > { %3192 = vmatmul.mubr.msk.f32.vlgmr.msra.gmra.mrb[10].mxu1 %vm1045_vm3, %v1629_v56 }
 0x5f3   : > { %3200 = vmatpush3.msra.mxu1 %v1813_v40  ;;  %3201 = vmatprep.mubr.msk.f32.mxu1 %vm3493_vm2, %v3492_v3 }
 0x5f4   : > { %v2307_v59 = vpop.xlane.xlu0 %2306  ;;  %3209 = vmatprep.subr.mxu1 %v3492_v3 }
 0x5f5   : > { %3444 = vrcp.f32 %v2307_v59 }
 0x5f6   : > { %3202 = vmatmul.mubr.msk.f32.vlgmr.msra.gmra.mrb[12].mxu1 %vm1045_vm3, %v1811_v58  ;;  %v2540_v58 = vld [vmem:[%s3646_s6 + $0x8] sm:$0xff] }
 0x5f7   : > { %v3441_v60 = vpop.eup %3440  ;;  %3210 = vmatpush3.msra.mxu1 %v1979_v50  ;;  %3211 = vmatprep.mubr.msk.f32.mxu1 %vm3493_vm2, %v3492_v3  ;;  %v3355_v59 = vpack.c.bf16 %v2540_v58, %v2539_v57 }
 0x5f8   : > { %v1977_v61 = vmul.f32 %v3441_v60, %v3427_v34  ;;  %v2145_v62 = vpop.permute.xlu0 %2144  ;;  %3219 = vmatprep.subr.mxu1 %v3492_v3  ;;  %v3443_v63 = vpop.eup %3442  ;;  %v2541_v60 = vld [vmem:[%s3646_s6 + $0x10] sm:$0xff] }
 0x5f9   : > { %v2143_v0 = vmul.f32 %v3443_v63, %v3962_v28 }
 0x5fa   : > { %3212 = vmatmul.mubr.msk.f32.vlgmr.msra.gmra.mrb[14].mxu1 %vm1045_vm3, %v1977_v61  ;;  %v2542_v61 = vld [vmem:[%s3646_s6 + $0x18] sm:$0xff] }
 0x5fb   : > { %3220 = vmatpush3.msra.mxu1 %v2145_v62  ;;  %3221 = vmatprep.mubr.msk.f32.mxu1 %vm3493_vm2, %v3492_v3  ;;  %v3359_v62 = vpack.c.bf16 %v2542_v61, %v2541_v60 }
 0x5fc   : > { %3229 = vmatprep.subr.mxu1 %v3492_v3 }
 0x5fe   : > { %3222 = vmatmul.mubr.msk.f32.vlgmr.msra.gmra.mrb[16].mxu1 %vm1045_vm3, %v2143_v0 }
 0x5ff   : > { %v3445_v2 = vpop.eup %3444  ;;  %3230 = vmatpush3.msra.mxu1 %v2311_v1  ;;  %3231 = vmatprep.mubr.msk.f32.mxu1 %vm3493_vm2, %v3492_v3  ;;  %v2403_v3 = vld [vmem:[%s4140_s29 + $0x10] sm:$0xff] }
 0x600   : > { %v2309_v4 = vmul.f32 %v3445_v2, %v3967_v36  ;;  %v3351_v18 = vpack.c.bf16 %v2404_v16, %v2403_v3  ;;  %3356 = vmatprep.subr.bf16.mxu1 %v3355_v59 }
 0x602   : > { %3232 = vmatmul.mubr.msk.f32.vlgmr.msra.gmra.mrb[18].mxu1 %vm1045_vm3, %v2309_v4  ;;  %3352 = vmatprep.subr.bf16.mxu0 %v3351_v18 }
 0x603   : > { %3354 = vmatpush3.bf16.msra.mxu0 %v3351_v18  ;;  %3358 = vmatpush3.bf16.msra.mxu1 %v3355_v59  ;;  %v2650_v18 = vld [vmem:[%s3656_s27 + $0x8] sm:$0xff] }
 0x604   : > { %3360 = vmatprep.subr.bf16.mxu1 %v3359_v62 }
 0x607   : > { %3362 = vmatpush3.bf16.msra.mxu1 %v3359_v62 }
 0x68c   : > { %v1204_v5 = vpop.f32.mrb[4].mxu1 }
 0x68d   : > { %v3163_v6 = vpop.f32.mrb[5].mxu1 }
 0x690   : > { %v1370_v9 = vpop.f32.mrb[6].mxu1 }
 0x691   : > { %1707 = vrot.lane.b32.xlu0 %v1370_v9, %s3505_s28  ;;  %v3173_v10 = vpop.f32.mrb[7].mxu1  ;;  %v2975_v9 = vld [vmem:[%s660_s5] ss:$0 sm:$0xff] }
 0x6c1   : > { %v1536_v13 = vpop.f32.mrb[8].mxu1 }
 0x6c2   : > { %1711 = vrot.lane.b32.xlu1 %v1536_v13, %s3506_s30  ;;  %v3183_v15 = vpop.f32.mrb[9].mxu1 }
 0x6c5   : > { %v1702_v17 = vpop.f32.mrb[10].mxu1 }
 0x6c6   : > { %1715 = vrot.lane.b32.xlu1 %v1702_v17, %s3507_s19  ;;  %v3193_v19 = vpop.f32.mrb[11].mxu1  ;;  %v2649_v17 = vld [vmem:[%s3656_s27] sm:$0xff] }
 0x6c7   : > { %v3363_v19 = vpack.c.bf16 %v2650_v18, %v2649_v17 }
 0x6c9   : > { %v1884_v20 = vpop.f32.mrb[12].mxu1  ;;  %3364 = vmatprep.subr.bf16.mxu0 %v3363_v19 }
 0x6ca   : > { %v3203_v21 = vpop.f32.mrb[13].mxu1 }
 0x6cb   : > { %v2652_v21 = vld [vmem:[%s3656_s27 + $0x18] sm:$0xff] }
 0x6cd   : > { %v2050_v22 = vpop.f32.mrb[14].mxu1 }
 0x6ce   : > { %2387 = vrot.lane.b32.xlu0 %v2050_v22, %s3505_s28  ;;  %v3213_v23 = vpop.f32.mrb[15].mxu1 }
 0x6cf   : > { %v2653_v23 = vld [vmem:[%s3656_s27 + $0x20] sm:$0xff] }
 0x6d1   : > { %v2216_v24 = vpop.f32.mrb[16].mxu1 }
 0x6d2   : > { %2391 = vrot.lane.b32.xlu0 %v2216_v24, %s3506_s30  ;;  %v3223_v7 = vpop.f32.mrb[17].mxu1  ;;  %v2654_v24 = vld [vmem:[%s3656_s27 + $0x28] sm:$0xff] }
 0x6d3   : > { %v3371_v7 = vpack.c.bf16 %v2654_v24, %v2653_v23 }
 0x6d5   : > { %v2382_v25 = vpop.f32.mrb[18].mxu1 }
 0x6d6   : > { %2395 = vrot.lane.b32.xlu1 %v2382_v25, %s3507_s19  ;;  %v3233_v26 = vpop.f32.mrb[19].mxu1  ;;  %v2655_v25 = vld [vmem:[%s3656_s27 + $0x30] sm:$0xff] }
 0x6d7   : > { %v2656_v26 = vld [vmem:[%s3656_s27 + $0x38] sm:$0xff] }
 0x703   : > { %v1708_v27 = vpop.permute.xlu0 %1707 }
 0x704   : > { %v1718_v29 = vsel %vm1045_vm3, %v1204_v5, %v1708_v27  ;;  %v3375_v27 = vpack.c.bf16 %v2656_v26, %v2655_v25 }
 0x734   : > { %v1712_v28 = vpop.permute.xlu1 %1711 }
 0x735   : > { %v1720_v30 = vsel %vm1719_vm4, %v1718_v29, %v1712_v28  ;;  %v2977_v28 = vld [vmem:[%s671_s8] ss:$0 sm:$0xff] }
 0x738   : > { %v1716_v33 = vpop.permute.xlu1 %1715 }
 0x739   : > { %v1722_v34 = vsel %vm1721_vm5, %v1720_v30, %v1716_v33 }
 0x73a   : > { %3242 = vmatprep.mubr.msk.f32.mxu0 %vm906_vm1, %v1722_v34 }
 0x740   : > { %v2388_v35 = vpop.permute.xlu0 %2387 }
 0x741   : > { %v2398_v37 = vsel %vm1045_vm3, %v1884_v20, %v2388_v35  ;;  %v2651_v20 = vld [vmem:[%s3656_s27 + $0x10] sm:$0xff] }
 0x742   : > { %v3367_v22 = vpack.c.bf16 %v2652_v21, %v2651_v20 }
 0x744   : > { %v2392_v36 = vpop.permute.xlu0 %2391 }
 0x745   : > { %v2399_v38 = vsel %vm1719_vm4, %v2398_v37, %v2392_v36 }
 0x748   : > { %v2396_v39 = vpop.permute.xlu1 %2395 }
 0x749   : > { %v2400_v40 = vsel %vm1721_vm5, %v2399_v38, %v2396_v39 }
 0x74a   : > { %3243 = vmatmul.mubr.msk.f32.vlgmr.msra.gmra.mrb[14].mxu0 %vm906_vm1, %v2400_v40 }
 0x74b   : > { %3366 = vmatpush3.bf16.msra.mxu0 %v3363_v19 }
 0x74c   : > { %3368 = vmatprep.subr.bf16.mxu0 %v3367_v22 }
 0x74f   : > { %3370 = vmatpush3.bf16.msra.mxu0 %v3367_v22 }
 0x750   : > { %3372 = vmatprep.subr.bf16.mxu0 %v3371_v7 }
 0x753   : > { %3374 = vmatpush3.bf16.msra.mxu0 %v3371_v7 }
 0x754   : > { %3376 = vmatprep.subr.bf16.mxu0 %v3375_v27 }
 0x757   : > { %3378 = vmatpush3.bf16.msra.mxu0 %v3375_v27 }
 0x81d   : > { %v3244_v42 = vpop.f32.mrb[14].mxu0 }
 0x81e   : > { %v2490_v43 = vadd.f32 %v3244_v42, %v2972_v41  ;;  %v2484_v44 = vpop.f32.mrb[15].mxu0 }
 0x81f   : > { %v2485_v45 = vadd.f32 %v2972_v41, %v2484_v44 }
 0x820   : > { %v4021_v46 = vadd.f32 %v2490_v43, %v3836_v32 }
 0x821   : > { %v4024_v47 = vadd.f32 %v2485_v45, %v3834_v31 }
 0x822   : > { %v2500_v8 = vsel %vm906_vm1, %v4021_v46, 0.0 }
 0x823   : > { %2501 = vadd.xlane.f32.xlu1 %v2500_v8  ;;  %v2497_v48 = vsel %vm906_vm1, %v4024_v47, 0.0 }
 0x824   : > { %2498 = vadd.xlane.f32.xlu0 %v2497_v48 }
 0x8b0   : > { %v2502_v49 = vpop.xlane.xlu1 %2501 }
 0x8b1   : > { %v2504_v50 = vmul.f32 0.03125, %v2502_v49  ;;  %v2499_v51 = vpop.xlane.xlu0 %2498 }
 0x8b2   : > { %v2503_v32 = vmul.f32 0.03125, %v2499_v51 }
 0x8b3   : > { %v2506_v52 = vsub.f32 %v4021_v46, %v2504_v50 }
 0x8b4   : > { %v2505_v31 = vsub.f32 %v4024_v47, %v2503_v32 }
 0x8b5   : > { %v2508_v55 = vmul.f32 %v2506_v52, %v2506_v52 }
 0x8b6   : > { %v2507_v53 = vmul.f32 %v2505_v31, %v2505_v31 }
 0x8b7   : > { %v2512_v56 = vsel %vm906_vm1, %v2508_v55, 0.0 }
 0x8b8   : > { %v2509_v54 = vsel %vm906_vm1, %v2507_v53, 0.0 }
 0x8b9   : > { %2510 = vadd.xlane.f32.xlu0 %v2509_v54 }
 0x8bd   : > { %2513 = vadd.xlane.f32.xlu0 %v2512_v56 }
 0x946   : > { %v2511_v63 = vpop.xlane.xlu0 %2510 }
 0x947   : > { %v2515_v0 = vmul.f32 0.03125, %v2511_v63 }
 0x949   : > { %v2517_v1 = vadd.f32 1e-12, %v2515_v0 }
 0x94a   : > { %v2514_v2 = vpop.xlane.xlu0 %2513 }
 0x94b   : > { %3446 = vrsqrt.f32 %v2517_v1  ;;  %v2516_v4 = vmul.f32 0.03125, %v2514_v2 }
 0x94d   : > { %v2518_v5 = vadd.f32 1e-12, %v2516_v4 }
 0x94f   : > { %3448 = vrsqrt.f32 %v2518_v5 }
 0x955   : > { %v3447_v6 = vpop.eup %3446 }
 0x956   : > { %v2521_v10 = vmul.f32 %v3447_v6, %v2505_v31  ;;  %v2980_v31 = vld [vmem:[%s679_s0] ss:$0 sm:$0xff] }
 0x958   : > { %v2529_v12 = vmul.f32 %v2975_v9, %v2521_v10 }
 0x959   : > { %v3449_v13 = vpop.eup %3448 }
 0x95a   : > { %v2522_v14 = vmul.f32 %v3449_v13, %v2506_v52  ;;  %v2537_v15 = vadd.f32 %v2976_v11, %v2529_v12 }
 0x95c   : > { %v2530_v3 = vmul.f32 %v2975_v9, %v2522_v14  ;;  %3253 = vmatprep.mubr.msk.f32.mxu1 %vm906_vm1, %v2537_v15 }
 0x95e   : > { %v2538_v16 = vadd.f32 %v2976_v11, %v2530_v3 }
 0x960   : > { %3254 = vmatmul.mubr.msk.f32.vlgmr.msra.gmra.mrb[20].mxu1 %vm906_vm1, %v2538_v16 }
 0xa33   : > { %v3255_v29 = vpop.f32.mrb[20].mxu1 }
 0xa34   : > { %v2628_v30 = vadd.f32 %v3255_v29, %v2977_v28  ;;  %v2622_v33 = vpop.f32.mrb[21].mxu1 }
 0xa35   : > { %v2623_v34 = vadd.f32 %v2977_v28, %v2622_v33 }
 0xa36   : > { %v2634_v35 = vmul.f32 0.044715, %v2628_v30  ;;  %v2632_v51 = vmul.f32 0.5, %v2628_v30 }
 0xa37   : > { %v2633_v36 = vmul.f32 0.044715, %v2623_v34  ;;  %v2631_v49 = vmul.f32 0.5, %v2623_v34 }
 0xa38   : > { %v2636_v37 = vmul.f32 %v2634_v35, %v2628_v30 }
 0xa39   : > { %v2635_v38 = vmul.f32 %v2633_v36, %v2623_v34 }
 0xa3a   : > { %v2638_v39 = vmul.f32 %v2636_v37, %v2628_v30 }
 0xa3b   : > { %v2637_v40 = vmul.f32 %v2635_v38, %v2623_v34 }
 0xa3c   : > { %v2640_v41 = vadd.f32 %v2638_v39, %v2628_v30 }
 0xa3d   : > { %v2639_v42 = vadd.f32 %v2637_v40, %v2623_v34 }
 0xa3e   : > { %v2642_v43 = vmul.f32 0.7978846, %v2640_v41 }
 0xa3f   : > { %v2641_v44 = vmul.f32 0.7978846, %v2639_v42 }
 0xa40   : > { %3450 = vtanh.f32 %v2642_v43 }
 0xa41   : > { %3452 = vtanh.f32 %v2641_v44 }
 0xa4a   : > { %v3451_v45 = vpop.eup %3450 }
 0xa4b   : > { %v3453_v8 = vpop.eup %3452  ;;  %v2646_v48 = vadd.f32 1.0, %v3451_v45 }
 0xa4c   : > { %v2645_v50 = vadd.f32 1.0, %v3453_v8 }
 0xa4d   : > { %v2648_v52 = vmul.f32 %v2646_v48, %v2632_v51 }
 0xa4e   : > { %v2647_v32 = vmul.f32 %v2645_v50, %v2631_v49 }
 0xa50   : > { %3272 = vmatprep.mubr.msk.f32.mxu0 %vm2664_vm6, %v2647_v32 }
 0xa51   : > { %3273 = vmatmul.mubr.msk.f32.vlgmr.msra.gmra.mrb[16].mxu0 %vm2664_vm6, %v2648_v52 }
 0xb24   : > { %v3274_v53 = vpop.f32.mrb[16].mxu0  ;;  %2753 = sbr.rel (%p2983_p5) target bundleno = 2875 (0xb3b), region = 92 }
 0xb25   : > { %v2743_v54 = vadd.f32 %v3274_v53, %v2980_v31  ;;  %v2737_v55 = vpop.f32.mrb[17].mxu0 }
 0xb26   : > { %v2738_v56 = vadd.f32 %v2980_v31, %v2737_v55 }
 0xb27   : > { %v2747_v57 = vadd.f32 %v2743_v54, %v4021_v46 }
 0xb28   : > { %v2746_v58 = vadd.f32 %v2738_v56, %v4024_v47 }
 0xb29   : > { %2749 = vst.msk [vmem:[#allocation2 + $0x8] sm:$0xff] %vm906_vm1, %v2747_v57  ;;  %v2763_v60 = vsel (!%p2983_p5), %vm906_vm1, %v2747_v57, 0.0 }
 0xb2a   : > { %2748 = vst.msk [vmem:[#allocation2] sm:$0xff] %vm906_vm1, %v2746_v58  ;;  %v2754_v59 = vsel (!%p2983_p5), %vm906_vm1, %v2746_v58, 0.0  ;;  %v2764_v62 = vrot.slane (!%p2983_p5), %v2763_v60, 4 }
 0xb2b   : > { %v2755_v61 = vrot.slane %v2754_v59, 4 }
 0xb2c   : > { %v2765_v0 = vadd.f32 %v2764_v62, %v2763_v60 }
 0xb2d   : > { %v2756_v63 = vadd.f32 %v2755_v61, %v2754_v59 }
 0xb2e   : > { %v2766_v2 = vrot.slane %v2765_v0, 2 }
 0xb2f   : > { %v2757_v1 = vrot.slane %v2756_v63, 2 }
 0xb30   : > { %v2767_v4 = vadd.f32 %v2766_v2, %v2765_v0 }
 0xb31   : > { %v2758_v46 = vadd.f32 %v2757_v1, %v2756_v63 }
 0xb32   : > { %v2768_v5 = vrot.slane %v2767_v4, 1 }
 0xb33   : > { %v2759_v47 = vrot.slane %v2758_v46, 1 }
 0xb34   : > { %v2769_v9 = vadd.f32 %v2768_v5, %v2767_v4 }
 0xb35   : > { %v2760_v6 = vadd.f32 %v2759_v47, %v2758_v46 }
 0xb36   : > { %v2770_v11 = vmul.f32 0.125, %v2769_v9 }
 0xb37   : > { %v2762_v10 = vmul.f32 0.125, %v2760_v6 }
 0xb39   : > { %v2772_v12 = vsel %vm2771_vm7, %v2762_v10, %v2770_v11 }
 0xb3a   : > { %2774 = vst.msk [vmem:[#allocation3] sm:$0x3] %vm2773_vm8, %v2772_v12 }
 0xb3b PF: > { %p3383_p6 = scmp.eq.s32.totalorder %s3600_s22, 1  ;;  %s3508_s23 = smov [#allocation3]  }
 0xb3c   : > { %s2782_s0 = sshll.u32 %s3508_s23, 4  ;;  %s2783_s0 = int_to_ptr.vmem [resolvable:$true] %s2782_s0 }
 0xb3d   : > { %s3454_s26 = scalar_lea.vmem %s2783_s0, 32  ;;  %p3461_p10 = scmp.lt.s32.totalorder %s2783_s0, %s2783_s0 }
 0xb3e   : > { %p3455_p7 = scmp.ne.s32.totalorder %s2783_s0, %s3454_s26  ;;  %p3462_p11 = scmp.lt.s32.totalorder %s3454_s26, %s3454_s26 }
 0xb40   : > { %p3456_p8 = pnand %p3455_p7, %p3383_p6  ;;  %p3463_p12 = por %p3462_p11, %p3461_p10 }
 0xb42   : > { %p3457_p9 = pneg %p3456_p8 }
 0xb44   : > { %p3464_p13 = pnand %p3463_p12, %p3457_p9 }
 0xb46   : > { %3467 = shalt.err (!%p3464_p13)
}
 0xb47   : > { %s4142_s30 = sld [smem:[#allocation13_spill]] }
 0xb4d   : > { %s3468_s19 = scalar_lea.hbm %s4142_s30, 32 }
 0xb4e   : > { %p3469_p0 = scmp.ne.s32.totalorder %s4142_s30, %s3468_s19  ;;  %p3474_p3 = scmp.lt.u32.totalorder %s3468_s19, %s4142_s30 }
 0xb50   : > { %p3470_p1 = pnand %p3469_p0, %p3383_p6 }
 0xb52   : > { %p3471_p2 = pneg %p3470_p1 }
 0xb54   : > { %p3476_p4 = pnand %p3474_p3, %p3471_p2 }
 0xb56   : > { %3479 = shalt.err (!%p3476_p4)
}
 0xb57   : > { %3380 = dma.vmem_to_hbm [thread:$0]  (%p3383_p6), %s2783_s0, 32, %s4142_s30, [#allocation4]  }
 0xb58   : > { %3485 = dma.done.wait (%p3383_p6), [#allocation4], 32  }
 0xb59   : > { %3487 = vsyncadd (%p3383_p6), [#allocation4], 4294967264 }
 0xb5a PF: > { %s4143_s4 = sld [smem:[#allocation6_spill]] }
 0xb60   : > { %s27_s21 = sadd.s32 1, %s4143_s4  }
 0xb61   : > { %p24_p5 = scmp.ge.s32.totalorder %s27_s21, 4  }
 0xb63   :  { %26 = sbr.rel (!%p24_p5) target bundleno = 8 (0x8), region = 152 }
 0xb6a   :  { %2795 = vsyncpa [#allocation4], 1 }
 0xb6b   :  { %2797 = vsyncpa [#allocation4 + $0x1], 1 }

</bundles_post_ra>
